<compile_context>
chip_gen: v5e
topology: v5e:2x2
jax: 0.10.0
libtpu: 0.0.40
codegen_flags: <defaults>
</compile_context>

<pallas_src>
import functools

import numpy as np
import jax
import jax.numpy as jnp
from jax import lax
from jax.experimental import pallas as pl
from jax.experimental.pallas import tpu as pltpu

LEAK = 0.01          # nn.LeakyReLU default negative_slope
EPS = 1e-5           # nn.GroupNorm default eps
LANE = 128           # TPU lane width
SUB = 8              # TPU sublane width


def _compute_num_groups(channels):
    num_groups = min(4, channels)
    if channels % num_groups != 0:
        for i in range(num_groups, 0, -1):
            if channels % i == 0:
                num_groups = i
                break
    return num_groups


def _round_up(x, m):
    return (x + m - 1) // m * m


def _leaky(v):
    return jnp.where(v > 0, v, LEAK * v)


# ---------------------------------------------------------------------------
# fused kernel: one grid step == one batch element, whole (Cp, L) frame in VMEM
# ---------------------------------------------------------------------------
def _fused_block_kernel(x_ref, w1_ref, b1_ref, g1_ref, be1_ref,
                        w2_ref, b2_ref, g2_ref, be2_ref, o_ref,
                        *, K, dil, hal, T, C, G, Cp, L, use_mxu):
    f32 = jnp.float32
    x = x_ref[0].astype(f32)                                  # (Cp, L)

    # Valid-time mask: frame columns [hal, hal+T) hold real samples; the hal
    # columns on each side are the conv 'same' zero padding, the rest is the
    # round-up-to-128 lane padding.
    tcol = lax.broadcasted_iota(jnp.int32, (1, L), 1)
    vmask = ((tcol >= hal) & (tcol < hal + T)).astype(f32)    # (1, L)

    # Per-group channel masks on the sublane axis (G <= 4, built once).
    cg = C // G
    ridx = lax.broadcasted_iota(jnp.int32, (Cp, 1), 0)
    gmasks = [((ridx >= g * cg) & (ridx < (g + 1) * cg)).astype(f32)
              for g in range(G)]                              # each (Cp, 1)

    def shift_t(a, s):
        """Shift right by static s along the lane (time) axis, zero fill."""
        if s == 0:
            return a
        z = jnp.zeros((Cp, abs(s)), f32)
        if s > 0:
            return jnp.concatenate([z, a[:, :L - s]], axis=1)
        return jnp.concatenate([a[:, -s:], z], axis=1)

    def conv(a, w_ref_, b_ref_):
        """'same' conv along time as a per-tap accumulation (no im2col buffer)."""
        w = w_ref_[...].astype(f32)                           # (K, C_out, C_in)
        acc = jnp.zeros((Cp, L), f32)
        for k in range(K):
            xs = shift_t(a, hal - k * dil)                    # xs[:, j] = a[:, j - hal + k*dil]
            if use_mxu:
                # Lane-dense MXU matmul; N = time axis -> full MXU width.
                acc = acc + jnp.dot(w[k], xs, preferred_element_type=f32)
            else:
                # Small-C path: C*K shifted VPU multiply-adds (review item 4b).
                for i in range(C):
                    acc = acc + w[k, :, i:i + 1] * xs[i:i + 1, :]
        # Add bias, then zero everything outside the valid window so the next
        # conv sees the correct zero padding (and GN stats stay clean).
        return (acc + b_ref_[...].astype(f32)) * vmask

    def group_norm(h, gamma_ref, beta_ref):
        """Exact GroupNorm, returned as a per-channel affine (scale, shift)."""
        gamma = gamma_ref[...].astype(f32)                    # (Cp, 1)
        beta = beta_ref[...].astype(f32)
        inv_n = 1.0 / float(cg * T)
        # First moment: h is already zero outside the valid window.
        s1_c = jnp.sum(h, axis=1, keepdims=True)              # (Cp, 1)
        mean_c = jnp.zeros((Cp, 1), f32)
        for gm in gmasks:
            m_g = jnp.sum(s1_c * gm, axis=0, keepdims=True) * inv_n   # (1, 1)
            mean_c = mean_c + gm * m_g
        # Centred second moment (avoids E[x^2]-E[x]^2 cancellation).
        d = (h - mean_c) * vmask
        s2_c = jnp.sum(d * d, axis=1, keepdims=True)          # (Cp, 1)
        var_c = jnp.zeros((Cp, 1), f32)
        for gm in gmasks:
            v_g = jnp.sum(s2_c * gm, axis=0, keepdims=True) * inv_n
            var_c = var_c + gm * v_g
        scale = gamma * lax.rsqrt(var_c + EPS)                # padded rows: gamma=0 -> scale=0
        shift = beta - mean_c * scale
        return scale, shift

    h1 = conv(x, w1_ref, b1_ref)
    sc1, sh1 = group_norm(h1, g1_ref, be1_ref)
    a1 = _leaky(h1 * sc1 + sh1) * vmask                       # re-mask: conv2 zero padding
    h2 = conv(a1, w2_ref, b2_ref)
    sc2, sh2 = group_norm(h2, g2_ref, be2_ref)
    o_ref[0] = _leaky(h2 * sc2 + sh2 + x).astype(o_ref.dtype)


# ---------------------------------------------------------------------------
# public wrapper
# ---------------------------------------------------------------------------
def residual_conv_block(x_nct, params, *, kernel_size=3, dilation=1):
    """x_nct: (B, C, T) in the PyTorch NCW layout.  Returns (B, C, T)."""
    w1, b1, g1, be1, w2, b2, g2, be2 = params
    B, C, T = x_nct.shape
    K, dil = int(kernel_size), int(dilation)
    assert K % 2 == 1, "residual add implies a 'same' conv (odd kernel_size)"
    hal = (K - 1) // 2 * dil
    G = _compute_num_groups(C)
    Cp = max(SUB, _round_up(C, SUB))            # sublane pad only (8), NOT 128
    L = _round_up(T + 2 * hal, LANE)            # lane-dense padded time frame
    f32 = jnp.float32

    # Fused single-pass kernel keeps the whole (Cp, L) frame (plus a handful
    # of temporaries and the pipelined in/out blocks) resident in VMEM.
    # TODO(synk): fall back to a time-tiled 3-pass variant beyond this budget.
    assert 16 * Cp * L * 4 <= 24 * 1024 * 1024, (
        "activation frame too large for the fused single-pass kernel")

    def pad_cols(v):                            # (C,) -> (Cp, 1)
        return jnp.zeros((Cp, 1), f32).at[:C, 0].set(v.astype(f32))

    def pad_w(w):                               # torch (O, I, K) -> (K, Cp, Cp)
        wt = jnp.transpose(w.astype(f32), (2, 0, 1))
        return jnp.zeros((K, Cp, Cp), f32).at[:, :C, :C].set(wt)

    # Native layout, zero-embedded into the padded frame (no transposes).
    xp = jnp.zeros((B, Cp, L), f32).at[:, :C, hal:hal + T].set(x_nct.astype(f32))

    use_mxu = Cp >= 32      # small C -> shifted VPU MACs; larger C -> MXU matmuls

    kern = functools.partial(
        _fused_block_kernel, K=K, dil=dil, hal=hal, T=T, C=C, G=G,
        Cp=Cp, L=L, use_mxu=use_mxu)

    flops = int(B * (2 * 2 * K * Cp * Cp * L + 24 * Cp * L))
    bytes_accessed = int(4 * (2 * B * Cp * L + 2 * K * Cp * Cp + 8 * Cp))

    full2 = lambda b: (0, 0)
    full3 = lambda b: (0, 0, 0)

    out = pl.pallas_call(
        kern,
        grid=(B,),
        in_specs=[
            pl.BlockSpec((1, Cp, L), lambda b: (b, 0, 0)),    # x (padded frame)
            pl.BlockSpec((K, Cp, Cp), full3),                 # conv1 weight
            pl.BlockSpec((Cp, 1), full2),                     # conv1 bias
            pl.BlockSpec((Cp, 1), full2),                     # gn1 gamma
            pl.BlockSpec((Cp, 1), full2),                     # gn1 beta
            pl.BlockSpec((K, Cp, Cp), full3),                 # conv2 weight
            pl.BlockSpec((Cp, 1), full2),                     # conv2 bias
            pl.BlockSpec((Cp, 1), full2),                     # gn2 gamma
            pl.BlockSpec((Cp, 1), full2),                     # gn2 beta
        ],
        out_specs=pl.BlockSpec((1, Cp, L), lambda b: (b, 0, 0)),
        out_shape=jax.ShapeDtypeStruct((B, Cp, L), f32),
        compiler_params=pltpu.CompilerParams(
            dimension_semantics=("parallel",)),               # shards batch over v7x's 2 TCs
        cost_estimate=pl.CostEstimate(flops=flops, transcendentals=int(2 * B * G),
                                      bytes_accessed=bytes_accessed),
    )(xp, pad_w(w1), pad_cols(b1), pad_cols(g1), pad_cols(be1),
      pad_w(w2), pad_cols(b2), pad_cols(g2), pad_cols(be2))

    return out[:, :C, hal:hal + T].astype(x_nct.dtype)


# ---------------------------------------------------------------------------
# pure-JAX reference (matches the PyTorch module)
# ---------------------------------------------------------------------------
def _reference_forward(x, params, *, kernel_size=3, dilation=1):
    w1, b1, g1, be1, w2, b2, g2, be2 = params
    B, C, T = x.shape
    G = _compute_num_groups(C)
    pad = (kernel_size - 1) // 2 * dilation

    def conv(h, w, b):
        y = lax.conv_general_dilated(
            h, w, window_strides=(1,), padding=[(pad, pad)],
            rhs_dilation=(dilation,),
            dimension_numbers=("NCH", "OIH", "NCH"),
            precision=lax.Precision.HIGHEST)
        return y + b[None, :, None]

    def gn(h, gamma, beta):
        hg = h.reshape(B, G, C // G, T)
        mean = hg.mean(axis=(2, 3), keepdims=True)
        var = hg.var(axis=(2, 3), keepdims=True)
        hn = ((hg - mean) / jnp.sqrt(var + EPS)).reshape(B, C, T)
        return hn * gamma[None, :, None] + beta[None, :, None]

    h = _leaky(gn(conv(x, w1, b1), g1, be1))
    h = gn(conv(h, w2, b2), g2, be2)
    return _leaky(h + x)


# ---------------------------------------------------------------------------
# test
# ---------------------------------------------------------------------------
def _run_case(key, *, B, C, T, K, dil):
    ks = jax.random.split(key, 9)
    w1 = jax.random.normal(ks[0], (C, C, K), jnp.float32) * 0.3   # (O, I, K)
    b1 = jax.random.normal(ks[1], (C,), jnp.float32) * 0.1
    g1 = 1.0 + 0.1 * jax.random.normal(ks[2], (C,), jnp.float32)
    be1 = 0.1 * jax.random.normal(ks[3], (C,), jnp.float32)
    w2 = jax.random.normal(ks[4], (C, C, K), jnp.float32) * 0.3
    b2 = jax.random.normal(ks[5], (C,), jnp.float32) * 0.1
    g2 = 1.0 + 0.1 * jax.random.normal(ks[6], (C,), jnp.float32)
    be2 = 0.1 * jax.random.normal(ks[7], (C,), jnp.float32)
    params = (w1, b1, g1, be1, w2, b2, g2, be2)
    x = jax.random.normal(ks[8], (B, C, T), jnp.float32)

    fwd = jax.jit(functools.partial(residual_conv_block,
                                    kernel_size=K, dilation=dil))
    out = jax.block_until_ready(fwd(x, params))
    ref = jax.block_until_ready(
        _reference_forward(x, params, kernel_size=K, dilation=dil))
    assert out.shape == (B, C, T)
    np.testing.assert_allclose(np.asarray(out), np.asarray(ref),
                               rtol=1e-3, atol=1e-3)


if __name__ == "__main__":
    root = jax.random.PRNGKey(0)
    k1, k2 = jax.random.split(root)
    # typical sing_vocoder config: small channel count, groups == channels
    _run_case(k1, B=2, C=4, T=16, K=3, dil=1)
    # dilation + 3 groups (C=6) + odd T exercising the halo / ragged padding
    _run_case(k2, B=2, C=6, T=20, K=3, dil=2)
    print("KERNEL_OK")
</pallas_src>

<mosaic_0001>
module attributes {stable_mosaic.version = 11 : i64} {
  func.func @_fused_block_kernel(%arg0: i32, %arg1: memref<1x8x128xf32, #tpu.memory_space<vmem>>, %arg2: memref<3x8x8xf32, #tpu.memory_space<vmem>>, %arg3: memref<8x1xf32, #tpu.memory_space<vmem>>, %arg4: memref<8x1xf32, #tpu.memory_space<vmem>>, %arg5: memref<8x1xf32, #tpu.memory_space<vmem>>, %arg6: memref<3x8x8xf32, #tpu.memory_space<vmem>>, %arg7: memref<8x1xf32, #tpu.memory_space<vmem>>, %arg8: memref<8x1xf32, #tpu.memory_space<vmem>>, %arg9: memref<8x1xf32, #tpu.memory_space<vmem>>, %arg10: memref<1x8x128xf32, #tpu.memory_space<vmem>>) attributes {dimension_semantics = [#tpu.dimension_semantics<parallel>], iteration_bounds = array<i64: 2>, scalar_prefetch = 0 : i64, scratch_operands = 0 : i64, tpu.core_type = #tpu.core_type<tc>, window_params = [{transform_indices = @transform_0, window_bounds = array<i64: 1, 8, 128>}, {pipeline_mode = #tpu.pipeline_mode<synchronous>, transform_indices = @transform_1, window_bounds = array<i64: 3, 8, 8>}, {pipeline_mode = #tpu.pipeline_mode<synchronous>, transform_indices = @transform_2, window_bounds = array<i64: 8, 1>}, {pipeline_mode = #tpu.pipeline_mode<synchronous>, transform_indices = @transform_3, window_bounds = array<i64: 8, 1>}, {pipeline_mode = #tpu.pipeline_mode<synchronous>, transform_indices = @transform_4, window_bounds = array<i64: 8, 1>}, {pipeline_mode = #tpu.pipeline_mode<synchronous>, transform_indices = @transform_5, window_bounds = array<i64: 3, 8, 8>}, {pipeline_mode = #tpu.pipeline_mode<synchronous>, transform_indices = @transform_6, window_bounds = array<i64: 8, 1>}, {pipeline_mode = #tpu.pipeline_mode<synchronous>, transform_indices = @transform_7, window_bounds = array<i64: 8, 1>}, {pipeline_mode = #tpu.pipeline_mode<synchronous>, transform_indices = @transform_8, window_bounds = array<i64: 8, 1>}, {transform_indices = @transform_9, window_bounds = array<i64: 1, 8, 128>}]} {
    %c0 = arith.constant 0 : index
    %c0_0 = arith.constant 0 : index
    %c0_1 = arith.constant 0 : index
    %0 = vector.load %arg1[%c0, %c0_0, %c0_1] : memref<1x8x128xf32, #tpu.memory_space<vmem>>, vector<1x8x128xf32>
    %1 = vector.shape_cast %0 : vector<1x8x128xf32> to vector<8x128xf32>
    %2 = tpu.iota {dimensions = array<i32: 1>} : vector<1x128xi32>
    %c1_i32 = arith.constant 1 : i32
    %3 = vector.broadcast %c1_i32 : i32 to vector<1x128xi32>
    %4 = arith.cmpi sge, %2, %3 : vector<1x128xi32>
    %c17_i32 = arith.constant 17 : i32
    %5 = vector.broadcast %c17_i32 : i32 to vector<1x128xi32>
    %6 = arith.cmpi slt, %2, %5 : vector<1x128xi32>
    %7 = arith.andi %4, %6 : vector<1x128xi1>
    %8 = arith.extui %7 : vector<1x128xi1> to vector<1x128xi32>
    %9 = arith.sitofp %8 : vector<1x128xi32> to vector<1x128xf32>
    %10 = tpu.iota {dimensions = array<i32: 0>} : vector<8x1xi32>
    %c0_i32 = arith.constant 0 : i32
    %11 = vector.broadcast %c0_i32 : i32 to vector<8x1xi32>
    %12 = arith.cmpi sge, %10, %11 : vector<8x1xi32>
    %c1_i32_2 = arith.constant 1 : i32
    %13 = vector.broadcast %c1_i32_2 : i32 to vector<8x1xi32>
    %14 = arith.cmpi slt, %10, %13 : vector<8x1xi32>
    %15 = arith.andi %12, %14 : vector<8x1xi1>
    %16 = arith.extui %15 : vector<8x1xi1> to vector<8x1xi32>
    %17 = arith.sitofp %16 : vector<8x1xi32> to vector<8x1xf32>
    %c1_i32_3 = arith.constant 1 : i32
    %18 = vector.broadcast %c1_i32_3 : i32 to vector<8x1xi32>
    %19 = arith.cmpi sge, %10, %18 : vector<8x1xi32>
    %c2_i32 = arith.constant 2 : i32
    %20 = vector.broadcast %c2_i32 : i32 to vector<8x1xi32>
    %21 = arith.cmpi slt, %10, %20 : vector<8x1xi32>
    %22 = arith.andi %19, %21 : vector<8x1xi1>
    %23 = arith.extui %22 : vector<8x1xi1> to vector<8x1xi32>
    %24 = arith.sitofp %23 : vector<8x1xi32> to vector<8x1xf32>
    %c2_i32_4 = arith.constant 2 : i32
    %25 = vector.broadcast %c2_i32_4 : i32 to vector<8x1xi32>
    %26 = arith.cmpi sge, %10, %25 : vector<8x1xi32>
    %c3_i32 = arith.constant 3 : i32
    %27 = vector.broadcast %c3_i32 : i32 to vector<8x1xi32>
    %28 = arith.cmpi slt, %10, %27 : vector<8x1xi32>
    %29 = arith.andi %26, %28 : vector<8x1xi1>
    %30 = arith.extui %29 : vector<8x1xi1> to vector<8x1xi32>
    %31 = arith.sitofp %30 : vector<8x1xi32> to vector<8x1xf32>
    %c3_i32_5 = arith.constant 3 : i32
    %32 = vector.broadcast %c3_i32_5 : i32 to vector<8x1xi32>
    %33 = arith.cmpi sge, %10, %32 : vector<8x1xi32>
    %c4_i32 = arith.constant 4 : i32
    %34 = vector.broadcast %c4_i32 : i32 to vector<8x1xi32>
    %35 = arith.cmpi slt, %10, %34 : vector<8x1xi32>
    %36 = arith.andi %33, %35 : vector<8x1xi1>
    %37 = arith.extui %36 : vector<8x1xi1> to vector<8x1xi32>
    %38 = arith.sitofp %37 : vector<8x1xi32> to vector<8x1xf32>
    %c0_6 = arith.constant 0 : index
    %c0_7 = arith.constant 0 : index
    %c0_8 = arith.constant 0 : index
    %39 = vector.load %arg2[%c0_6, %c0_7, %c0_8] : memref<3x8x8xf32, #tpu.memory_space<vmem>>, vector<3x8x8xf32>
    %cst = arith.constant 0.000000e+00 : f32
    %40 = vector.broadcast %cst : f32 to vector<8x128xf32>
    %cst_9 = arith.constant 0.000000e+00 : f32
    %41 = vector.broadcast %cst_9 : f32 to vector<8x1xf32>
    %42 = vector.extract_strided_slice %1 {offsets = [0, 0], sizes = [8, 127], strides = [1, 1]} : vector<8x128xf32> to vector<8x127xf32>
    %43 = tpu.concatenate %41, %42 in 1 : vector<8x1xf32>, vector<8x127xf32> -> vector<8x128xf32>
    %44 = vector.extract_strided_slice %39 {offsets = [0, 0, 0], sizes = [1, 8, 1], strides = [1, 1, 1]} : vector<3x8x8xf32> to vector<1x8x1xf32>
    %45 = vector.shape_cast %44 : vector<1x8x1xf32> to vector<8x1xf32>
    %46 = vector.extract_strided_slice %43 {offsets = [0, 0], sizes = [1, 128], strides = [1, 1]} : vector<8x128xf32> to vector<1x128xf32>
    %47 = vector.broadcast %45 : vector<8x1xf32> to vector<8x128xf32>
    %48 = vector.broadcast %46 : vector<1x128xf32> to vector<8x128xf32>
    %49 = arith.mulf %47, %48 : vector<8x128xf32>
    %50 = arith.addf %40, %49 : vector<8x128xf32>
    %51 = vector.extract_strided_slice %39 {offsets = [0, 0, 1], sizes = [1, 8, 1], strides = [1, 1, 1]} : vector<3x8x8xf32> to vector<1x8x1xf32>
    %52 = vector.shape_cast %51 : vector<1x8x1xf32> to vector<8x1xf32>
    %53 = vector.extract_strided_slice %43 {offsets = [1, 0], sizes = [1, 128], strides = [1, 1]} : vector<8x128xf32> to vector<1x128xf32>
    %54 = vector.broadcast %52 : vector<8x1xf32> to vector<8x128xf32>
    %55 = vector.broadcast %53 : vector<1x128xf32> to vector<8x128xf32>
    %56 = arith.mulf %54, %55 : vector<8x128xf32>
    %57 = arith.addf %50, %56 : vector<8x128xf32>
    %58 = vector.extract_strided_slice %39 {offsets = [0, 0, 2], sizes = [1, 8, 1], strides = [1, 1, 1]} : vector<3x8x8xf32> to vector<1x8x1xf32>
    %59 = vector.shape_cast %58 : vector<1x8x1xf32> to vector<8x1xf32>
    %60 = vector.extract_strided_slice %43 {offsets = [2, 0], sizes = [1, 128], strides = [1, 1]} : vector<8x128xf32> to vector<1x128xf32>
    %61 = vector.broadcast %59 : vector<8x1xf32> to vector<8x128xf32>
    %62 = vector.broadcast %60 : vector<1x128xf32> to vector<8x128xf32>
    %63 = arith.mulf %61, %62 : vector<8x128xf32>
    %64 = arith.addf %57, %63 : vector<8x128xf32>
    %65 = vector.extract_strided_slice %39 {offsets = [0, 0, 3], sizes = [1, 8, 1], strides = [1, 1, 1]} : vector<3x8x8xf32> to vector<1x8x1xf32>
    %66 = vector.shape_cast %65 : vector<1x8x1xf32> to vector<8x1xf32>
    %67 = vector.extract_strided_slice %43 {offsets = [3, 0], sizes = [1, 128], strides = [1, 1]} : vector<8x128xf32> to vector<1x128xf32>
    %68 = vector.broadcast %66 : vector<8x1xf32> to vector<8x128xf32>
    %69 = vector.broadcast %67 : vector<1x128xf32> to vector<8x128xf32>
    %70 = arith.mulf %68, %69 : vector<8x128xf32>
    %71 = arith.addf %64, %70 : vector<8x128xf32>
    %72 = vector.extract_strided_slice %39 {offsets = [1, 0, 0], sizes = [1, 8, 1], strides = [1, 1, 1]} : vector<3x8x8xf32> to vector<1x8x1xf32>
    %73 = vector.shape_cast %72 : vector<1x8x1xf32> to vector<8x1xf32>
    %74 = vector.extract_strided_slice %1 {offsets = [0, 0], sizes = [1, 128], strides = [1, 1]} : vector<8x128xf32> to vector<1x128xf32>
    %75 = vector.broadcast %73 : vector<8x1xf32> to vector<8x128xf32>
    %76 = vector.broadcast %74 : vector<1x128xf32> to vector<8x128xf32>
    %77 = arith.mulf %75, %76 : vector<8x128xf32>
    %78 = arith.addf %71, %77 : vector<8x128xf32>
    %79 = vector.extract_strided_slice %39 {offsets = [1, 0, 1], sizes = [1, 8, 1], strides = [1, 1, 1]} : vector<3x8x8xf32> to vector<1x8x1xf32>
    %80 = vector.shape_cast %79 : vector<1x8x1xf32> to vector<8x1xf32>
    %81 = vector.extract_strided_slice %1 {offsets = [1, 0], sizes = [1, 128], strides = [1, 1]} : vector<8x128xf32> to vector<1x128xf32>
    %82 = vector.broadcast %80 : vector<8x1xf32> to vector<8x128xf32>
    %83 = vector.broadcast %81 : vector<1x128xf32> to vector<8x128xf32>
    %84 = arith.mulf %82, %83 : vector<8x128xf32>
    %85 = arith.addf %78, %84 : vector<8x128xf32>
    %86 = vector.extract_strided_slice %39 {offsets = [1, 0, 2], sizes = [1, 8, 1], strides = [1, 1, 1]} : vector<3x8x8xf32> to vector<1x8x1xf32>
    %87 = vector.shape_cast %86 : vector<1x8x1xf32> to vector<8x1xf32>
    %88 = vector.extract_strided_slice %1 {offsets = [2, 0], sizes = [1, 128], strides = [1, 1]} : vector<8x128xf32> to vector<1x128xf32>
    %89 = vector.broadcast %87 : vector<8x1xf32> to vector<8x128xf32>
    %90 = vector.broadcast %88 : vector<1x128xf32> to vector<8x128xf32>
    %91 = arith.mulf %89, %90 : vector<8x128xf32>
    %92 = arith.addf %85, %91 : vector<8x128xf32>
    %93 = vector.extract_strided_slice %39 {offsets = [1, 0, 3], sizes = [1, 8, 1], strides = [1, 1, 1]} : vector<3x8x8xf32> to vector<1x8x1xf32>
    %94 = vector.shape_cast %93 : vector<1x8x1xf32> to vector<8x1xf32>
    %95 = vector.extract_strided_slice %1 {offsets = [3, 0], sizes = [1, 128], strides = [1, 1]} : vector<8x128xf32> to vector<1x128xf32>
    %96 = vector.broadcast %94 : vector<8x1xf32> to vector<8x128xf32>
    %97 = vector.broadcast %95 : vector<1x128xf32> to vector<8x128xf32>
    %98 = arith.mulf %96, %97 : vector<8x128xf32>
    %99 = arith.addf %92, %98 : vector<8x128xf32>
    %cst_10 = arith.constant 0.000000e+00 : f32
    %100 = vector.broadcast %cst_10 : f32 to vector<8x1xf32>
    %101 = vector.extract_strided_slice %1 {offsets = [0, 1], sizes = [8, 127], strides = [1, 1]} : vector<8x128xf32> to vector<8x127xf32>
    %102 = tpu.concatenate %101, %100 in 1 : vector<8x127xf32>, vector<8x1xf32> -> vector<8x128xf32>
    %103 = vector.extract_strided_slice %39 {offsets = [2, 0, 0], sizes = [1, 8, 1], strides = [1, 1, 1]} : vector<3x8x8xf32> to vector<1x8x1xf32>
    %104 = vector.shape_cast %103 : vector<1x8x1xf32> to vector<8x1xf32>
    %105 = vector.extract_strided_slice %102 {offsets = [0, 0], sizes = [1, 128], strides = [1, 1]} : vector<8x128xf32> to vector<1x128xf32>
    %106 = vector.broadcast %104 : vector<8x1xf32> to vector<8x128xf32>
    %107 = vector.broadcast %105 : vector<1x128xf32> to vector<8x128xf32>
    %108 = arith.mulf %106, %107 : vector<8x128xf32>
    %109 = arith.addf %99, %108 : vector<8x128xf32>
    %110 = vector.extract_strided_slice %39 {offsets = [2, 0, 1], sizes = [1, 8, 1], strides = [1, 1, 1]} : vector<3x8x8xf32> to vector<1x8x1xf32>
    %111 = vector.shape_cast %110 : vector<1x8x1xf32> to vector<8x1xf32>
    %112 = vector.extract_strided_slice %102 {offsets = [1, 0], sizes = [1, 128], strides = [1, 1]} : vector<8x128xf32> to vector<1x128xf32>
    %113 = vector.broadcast %111 : vector<8x1xf32> to vector<8x128xf32>
    %114 = vector.broadcast %112 : vector<1x128xf32> to vector<8x128xf32>
    %115 = arith.mulf %113, %114 : vector<8x128xf32>
    %116 = arith.addf %109, %115 : vector<8x128xf32>
    %117 = vector.extract_strided_slice %39 {offsets = [2, 0, 2], sizes = [1, 8, 1], strides = [1, 1, 1]} : vector<3x8x8xf32> to vector<1x8x1xf32>
    %118 = vector.shape_cast %117 : vector<1x8x1xf32> to vector<8x1xf32>
    %119 = vector.extract_strided_slice %102 {offsets = [2, 0], sizes = [1, 128], strides = [1, 1]} : vector<8x128xf32> to vector<1x128xf32>
    %120 = vector.broadcast %118 : vector<8x1xf32> to vector<8x128xf32>
    %121 = vector.broadcast %119 : vector<1x128xf32> to vector<8x128xf32>
    %122 = arith.mulf %120, %121 : vector<8x128xf32>
    %123 = arith.addf %116, %122 : vector<8x128xf32>
    %124 = vector.extract_strided_slice %39 {offsets = [2, 0, 3], sizes = [1, 8, 1], strides = [1, 1, 1]} : vector<3x8x8xf32> to vector<1x8x1xf32>
    %125 = vector.shape_cast %124 : vector<1x8x1xf32> to vector<8x1xf32>
    %126 = vector.extract_strided_slice %102 {offsets = [3, 0], sizes = [1, 128], strides = [1, 1]} : vector<8x128xf32> to vector<1x128xf32>
    %127 = vector.broadcast %125 : vector<8x1xf32> to vector<8x128xf32>
    %128 = vector.broadcast %126 : vector<1x128xf32> to vector<8x128xf32>
    %129 = arith.mulf %127, %128 : vector<8x128xf32>
    %130 = arith.addf %123, %129 : vector<8x128xf32>
    %c0_11 = arith.constant 0 : index
    %c0_12 = arith.constant 0 : index
    %131 = vector.load %arg3[%c0_11, %c0_12] : memref<8x1xf32, #tpu.memory_space<vmem>>, vector<8x1xf32>
    %132 = vector.broadcast %131 : vector<8x1xf32> to vector<8x128xf32>
    %133 = arith.addf %130, %132 : vector<8x128xf32>
    %134 = vector.broadcast %9 : vector<1x128xf32> to vector<8x128xf32>
    %135 = arith.mulf %133, %134 : vector<8x128xf32>
    %c0_13 = arith.constant 0 : index
    %c0_14 = arith.constant 0 : index
    %136 = vector.load %arg4[%c0_13, %c0_14] : memref<8x1xf32, #tpu.memory_space<vmem>>, vector<8x1xf32>
    %c0_15 = arith.constant 0 : index
    %c0_16 = arith.constant 0 : index
    %137 = vector.load %arg5[%c0_15, %c0_16] : memref<8x1xf32, #tpu.memory_space<vmem>>, vector<8x1xf32>
    %cst_17 = arith.constant dense<0.000000e+00> : vector<8xf32>
    %138 = vector.multi_reduction <add>, %135, %cst_17 [1] : vector<8x128xf32> to vector<8xf32>
    %139 = vector.shape_cast %138 : vector<8xf32> to vector<8x1xf32>
    %cst_18 = arith.constant 0.000000e+00 : f32
    %140 = vector.broadcast %cst_18 : f32 to vector<8x1xf32>
    %141 = arith.mulf %139, %17 : vector<8x1xf32>
    %cst_19 = arith.constant dense<0.000000e+00> : vector<1xf32>
    %142 = vector.multi_reduction <add>, %141, %cst_19 [0] : vector<8x1xf32> to vector<1xf32>
    %143 = vector.shape_cast %142 : vector<1xf32> to vector<1x1xf32>
    %cst_20 = arith.constant 6.250000e-02 : f32
    %144 = vector.broadcast %cst_20 : f32 to vector<1x1xf32>
    %145 = arith.mulf %143, %144 : vector<1x1xf32>
    %146 = vector.broadcast %145 : vector<1x1xf32> to vector<8x1xf32>
    %147 = arith.mulf %17, %146 : vector<8x1xf32>
    %148 = arith.addf %140, %147 : vector<8x1xf32>
    %149 = arith.mulf %139, %24 : vector<8x1xf32>
    %cst_21 = arith.constant dense<0.000000e+00> : vector<1xf32>
    %150 = vector.multi_reduction <add>, %149, %cst_21 [0] : vector<8x1xf32> to vector<1xf32>
    %151 = vector.shape_cast %150 : vector<1xf32> to vector<1x1xf32>
    %cst_22 = arith.constant 6.250000e-02 : f32
    %152 = vector.broadcast %cst_22 : f32 to vector<1x1xf32>
    %153 = arith.mulf %151, %152 : vector<1x1xf32>
    %154 = vector.broadcast %153 : vector<1x1xf32> to vector<8x1xf32>
    %155 = arith.mulf %24, %154 : vector<8x1xf32>
    %156 = arith.addf %148, %155 : vector<8x1xf32>
    %157 = arith.mulf %139, %31 : vector<8x1xf32>
    %cst_23 = arith.constant dense<0.000000e+00> : vector<1xf32>
    %158 = vector.multi_reduction <add>, %157, %cst_23 [0] : vector<8x1xf32> to vector<1xf32>
    %159 = vector.shape_cast %158 : vector<1xf32> to vector<1x1xf32>
    %cst_24 = arith.constant 6.250000e-02 : f32
    %160 = vector.broadcast %cst_24 : f32 to vector<1x1xf32>
    %161 = arith.mulf %159, %160 : vector<1x1xf32>
    %162 = vector.broadcast %161 : vector<1x1xf32> to vector<8x1xf32>
    %163 = arith.mulf %31, %162 : vector<8x1xf32>
    %164 = arith.addf %156, %163 : vector<8x1xf32>
    %165 = arith.mulf %139, %38 : vector<8x1xf32>
    %cst_25 = arith.constant dense<0.000000e+00> : vector<1xf32>
    %166 = vector.multi_reduction <add>, %165, %cst_25 [0] : vector<8x1xf32> to vector<1xf32>
    %167 = vector.shape_cast %166 : vector<1xf32> to vector<1x1xf32>
    %cst_26 = arith.constant 6.250000e-02 : f32
    %168 = vector.broadcast %cst_26 : f32 to vector<1x1xf32>
    %169 = arith.mulf %167, %168 : vector<1x1xf32>
    %170 = vector.broadcast %169 : vector<1x1xf32> to vector<8x1xf32>
    %171 = arith.mulf %38, %170 : vector<8x1xf32>
    %172 = arith.addf %164, %171 : vector<8x1xf32>
    %173 = vector.broadcast %172 : vector<8x1xf32> to vector<8x128xf32>
    %174 = arith.subf %135, %173 : vector<8x128xf32>
    %175 = vector.broadcast %9 : vector<1x128xf32> to vector<8x128xf32>
    %176 = arith.mulf %174, %175 : vector<8x128xf32>
    %177 = arith.mulf %176, %176 : vector<8x128xf32>
    %cst_27 = arith.constant dense<0.000000e+00> : vector<8xf32>
    %178 = vector.multi_reduction <add>, %177, %cst_27 [1] : vector<8x128xf32> to vector<8xf32>
    %179 = vector.shape_cast %178 : vector<8xf32> to vector<8x1xf32>
    %cst_28 = arith.constant 0.000000e+00 : f32
    %180 = vector.broadcast %cst_28 : f32 to vector<8x1xf32>
    %181 = arith.mulf %179, %17 : vector<8x1xf32>
    %cst_29 = arith.constant dense<0.000000e+00> : vector<1xf32>
    %182 = vector.multi_reduction <add>, %181, %cst_29 [0] : vector<8x1xf32> to vector<1xf32>
    %183 = vector.shape_cast %182 : vector<1xf32> to vector<1x1xf32>
    %cst_30 = arith.constant 6.250000e-02 : f32
    %184 = vector.broadcast %cst_30 : f32 to vector<1x1xf32>
    %185 = arith.mulf %183, %184 : vector<1x1xf32>
    %186 = vector.broadcast %185 : vector<1x1xf32> to vector<8x1xf32>
    %187 = arith.mulf %17, %186 : vector<8x1xf32>
    %188 = arith.addf %180, %187 : vector<8x1xf32>
    %189 = arith.mulf %179, %24 : vector<8x1xf32>
    %cst_31 = arith.constant dense<0.000000e+00> : vector<1xf32>
    %190 = vector.multi_reduction <add>, %189, %cst_31 [0] : vector<8x1xf32> to vector<1xf32>
    %191 = vector.shape_cast %190 : vector<1xf32> to vector<1x1xf32>
    %cst_32 = arith.constant 6.250000e-02 : f32
    %192 = vector.broadcast %cst_32 : f32 to vector<1x1xf32>
    %193 = arith.mulf %191, %192 : vector<1x1xf32>
    %194 = vector.broadcast %193 : vector<1x1xf32> to vector<8x1xf32>
    %195 = arith.mulf %24, %194 : vector<8x1xf32>
    %196 = arith.addf %188, %195 : vector<8x1xf32>
    %197 = arith.mulf %179, %31 : vector<8x1xf32>
    %cst_33 = arith.constant dense<0.000000e+00> : vector<1xf32>
    %198 = vector.multi_reduction <add>, %197, %cst_33 [0] : vector<8x1xf32> to vector<1xf32>
    %199 = vector.shape_cast %198 : vector<1xf32> to vector<1x1xf32>
    %cst_34 = arith.constant 6.250000e-02 : f32
    %200 = vector.broadcast %cst_34 : f32 to vector<1x1xf32>
    %201 = arith.mulf %199, %200 : vector<1x1xf32>
    %202 = vector.broadcast %201 : vector<1x1xf32> to vector<8x1xf32>
    %203 = arith.mulf %31, %202 : vector<8x1xf32>
    %204 = arith.addf %196, %203 : vector<8x1xf32>
    %205 = arith.mulf %179, %38 : vector<8x1xf32>
    %cst_35 = arith.constant dense<0.000000e+00> : vector<1xf32>
    %206 = vector.multi_reduction <add>, %205, %cst_35 [0] : vector<8x1xf32> to vector<1xf32>
    %207 = vector.shape_cast %206 : vector<1xf32> to vector<1x1xf32>
    %cst_36 = arith.constant 6.250000e-02 : f32
    %208 = vector.broadcast %cst_36 : f32 to vector<1x1xf32>
    %209 = arith.mulf %207, %208 : vector<1x1xf32>
    %210 = vector.broadcast %209 : vector<1x1xf32> to vector<8x1xf32>
    %211 = arith.mulf %38, %210 : vector<8x1xf32>
    %212 = arith.addf %204, %211 : vector<8x1xf32>
    %cst_37 = arith.constant 9.99999974E-6 : f32
    %213 = vector.broadcast %cst_37 : f32 to vector<8x1xf32>
    %214 = arith.addf %212, %213 : vector<8x1xf32>
    %215 = math.rsqrt %214 : vector<8x1xf32>
    %216 = arith.mulf %136, %215 : vector<8x1xf32>
    %217 = arith.mulf %172, %216 : vector<8x1xf32>
    %218 = arith.subf %137, %217 : vector<8x1xf32>
    %219 = vector.broadcast %216 : vector<8x1xf32> to vector<8x128xf32>
    %220 = arith.mulf %135, %219 : vector<8x128xf32>
    %221 = vector.broadcast %218 : vector<8x1xf32> to vector<8x128xf32>
    %222 = arith.addf %220, %221 : vector<8x128xf32>
    %cst_38 = arith.constant 0.000000e+00 : f32
    %223 = vector.broadcast %cst_38 : f32 to vector<8x128xf32>
    %224 = arith.cmpf ogt, %222, %223 : vector<8x128xf32>
    %cst_39 = arith.constant 0.00999999977 : f32
    %225 = vector.broadcast %cst_39 : f32 to vector<8x128xf32>
    %226 = arith.mulf %225, %222 : vector<8x128xf32>
    %227 = arith.select %224, %222, %226 : vector<8x128xi1>, vector<8x128xf32>
    %228 = vector.broadcast %9 : vector<1x128xf32> to vector<8x128xf32>
    %229 = arith.mulf %227, %228 : vector<8x128xf32>
    %c0_40 = arith.constant 0 : index
    %c0_41 = arith.constant 0 : index
    %c0_42 = arith.constant 0 : index
    %230 = vector.load %arg6[%c0_40, %c0_41, %c0_42] : memref<3x8x8xf32, #tpu.memory_space<vmem>>, vector<3x8x8xf32>
    %cst_43 = arith.constant 0.000000e+00 : f32
    %231 = vector.broadcast %cst_43 : f32 to vector<8x128xf32>
    %cst_44 = arith.constant 0.000000e+00 : f32
    %232 = vector.broadcast %cst_44 : f32 to vector<8x1xf32>
    %233 = vector.extract_strided_slice %229 {offsets = [0, 0], sizes = [8, 127], strides = [1, 1]} : vector<8x128xf32> to vector<8x127xf32>
    %234 = tpu.concatenate %232, %233 in 1 : vector<8x1xf32>, vector<8x127xf32> -> vector<8x128xf32>
    %235 = vector.extract_strided_slice %230 {offsets = [0, 0, 0], sizes = [1, 8, 1], strides = [1, 1, 1]} : vector<3x8x8xf32> to vector<1x8x1xf32>
    %236 = vector.shape_cast %235 : vector<1x8x1xf32> to vector<8x1xf32>
    %237 = vector.extract_strided_slice %234 {offsets = [0, 0], sizes = [1, 128], strides = [1, 1]} : vector<8x128xf32> to vector<1x128xf32>
    %238 = vector.broadcast %236 : vector<8x1xf32> to vector<8x128xf32>
    %239 = vector.broadcast %237 : vector<1x128xf32> to vector<8x128xf32>
    %240 = arith.mulf %238, %239 : vector<8x128xf32>
    %241 = arith.addf %231, %240 : vector<8x128xf32>
    %242 = vector.extract_strided_slice %230 {offsets = [0, 0, 1], sizes = [1, 8, 1], strides = [1, 1, 1]} : vector<3x8x8xf32> to vector<1x8x1xf32>
    %243 = vector.shape_cast %242 : vector<1x8x1xf32> to vector<8x1xf32>
    %244 = vector.extract_strided_slice %234 {offsets = [1, 0], sizes = [1, 128], strides = [1, 1]} : vector<8x128xf32> to vector<1x128xf32>
    %245 = vector.broadcast %243 : vector<8x1xf32> to vector<8x128xf32>
    %246 = vector.broadcast %244 : vector<1x128xf32> to vector<8x128xf32>
    %247 = arith.mulf %245, %246 : vector<8x128xf32>
    %248 = arith.addf %241, %247 : vector<8x128xf32>
    %249 = vector.extract_strided_slice %230 {offsets = [0, 0, 2], sizes = [1, 8, 1], strides = [1, 1, 1]} : vector<3x8x8xf32> to vector<1x8x1xf32>
    %250 = vector.shape_cast %249 : vector<1x8x1xf32> to vector<8x1xf32>
    %251 = vector.extract_strided_slice %234 {offsets = [2, 0], sizes = [1, 128], strides = [1, 1]} : vector<8x128xf32> to vector<1x128xf32>
    %252 = vector.broadcast %250 : vector<8x1xf32> to vector<8x128xf32>
    %253 = vector.broadcast %251 : vector<1x128xf32> to vector<8x128xf32>
    %254 = arith.mulf %252, %253 : vector<8x128xf32>
    %255 = arith.addf %248, %254 : vector<8x128xf32>
    %256 = vector.extract_strided_slice %230 {offsets = [0, 0, 3], sizes = [1, 8, 1], strides = [1, 1, 1]} : vector<3x8x8xf32> to vector<1x8x1xf32>
    %257 = vector.shape_cast %256 : vector<1x8x1xf32> to vector<8x1xf32>
    %258 = vector.extract_strided_slice %234 {offsets = [3, 0], sizes = [1, 128], strides = [1, 1]} : vector<8x128xf32> to vector<1x128xf32>
    %259 = vector.broadcast %257 : vector<8x1xf32> to vector<8x128xf32>
    %260 = vector.broadcast %258 : vector<1x128xf32> to vector<8x128xf32>
    %261 = arith.mulf %259, %260 : vector<8x128xf32>
    %262 = arith.addf %255, %261 : vector<8x128xf32>
    %263 = vector.extract_strided_slice %230 {offsets = [1, 0, 0], sizes = [1, 8, 1], strides = [1, 1, 1]} : vector<3x8x8xf32> to vector<1x8x1xf32>
    %264 = vector.shape_cast %263 : vector<1x8x1xf32> to vector<8x1xf32>
    %265 = vector.extract_strided_slice %229 {offsets = [0, 0], sizes = [1, 128], strides = [1, 1]} : vector<8x128xf32> to vector<1x128xf32>
    %266 = vector.broadcast %264 : vector<8x1xf32> to vector<8x128xf32>
    %267 = vector.broadcast %265 : vector<1x128xf32> to vector<8x128xf32>
    %268 = arith.mulf %266, %267 : vector<8x128xf32>
    %269 = arith.addf %262, %268 : vector<8x128xf32>
    %270 = vector.extract_strided_slice %230 {offsets = [1, 0, 1], sizes = [1, 8, 1], strides = [1, 1, 1]} : vector<3x8x8xf32> to vector<1x8x1xf32>
    %271 = vector.shape_cast %270 : vector<1x8x1xf32> to vector<8x1xf32>
    %272 = vector.extract_strided_slice %229 {offsets = [1, 0], sizes = [1, 128], strides = [1, 1]} : vector<8x128xf32> to vector<1x128xf32>
    %273 = vector.broadcast %271 : vector<8x1xf32> to vector<8x128xf32>
    %274 = vector.broadcast %272 : vector<1x128xf32> to vector<8x128xf32>
    %275 = arith.mulf %273, %274 : vector<8x128xf32>
    %276 = arith.addf %269, %275 : vector<8x128xf32>
    %277 = vector.extract_strided_slice %230 {offsets = [1, 0, 2], sizes = [1, 8, 1], strides = [1, 1, 1]} : vector<3x8x8xf32> to vector<1x8x1xf32>
    %278 = vector.shape_cast %277 : vector<1x8x1xf32> to vector<8x1xf32>
    %279 = vector.extract_strided_slice %229 {offsets = [2, 0], sizes = [1, 128], strides = [1, 1]} : vector<8x128xf32> to vector<1x128xf32>
    %280 = vector.broadcast %278 : vector<8x1xf32> to vector<8x128xf32>
    %281 = vector.broadcast %279 : vector<1x128xf32> to vector<8x128xf32>
    %282 = arith.mulf %280, %281 : vector<8x128xf32>
    %283 = arith.addf %276, %282 : vector<8x128xf32>
    %284 = vector.extract_strided_slice %230 {offsets = [1, 0, 3], sizes = [1, 8, 1], strides = [1, 1, 1]} : vector<3x8x8xf32> to vector<1x8x1xf32>
    %285 = vector.shape_cast %284 : vector<1x8x1xf32> to vector<8x1xf32>
    %286 = vector.extract_strided_slice %229 {offsets = [3, 0], sizes = [1, 128], strides = [1, 1]} : vector<8x128xf32> to vector<1x128xf32>
    %287 = vector.broadcast %285 : vector<8x1xf32> to vector<8x128xf32>
    %288 = vector.broadcast %286 : vector<1x128xf32> to vector<8x128xf32>
    %289 = arith.mulf %287, %288 : vector<8x128xf32>
    %290 = arith.addf %283, %289 : vector<8x128xf32>
    %cst_45 = arith.constant 0.000000e+00 : f32
    %291 = vector.broadcast %cst_45 : f32 to vector<8x1xf32>
    %292 = vector.extract_strided_slice %229 {offsets = [0, 1], sizes = [8, 127], strides = [1, 1]} : vector<8x128xf32> to vector<8x127xf32>
    %293 = tpu.concatenate %292, %291 in 1 : vector<8x127xf32>, vector<8x1xf32> -> vector<8x128xf32>
    %294 = vector.extract_strided_slice %230 {offsets = [2, 0, 0], sizes = [1, 8, 1], strides = [1, 1, 1]} : vector<3x8x8xf32> to vector<1x8x1xf32>
    %295 = vector.shape_cast %294 : vector<1x8x1xf32> to vector<8x1xf32>
    %296 = vector.extract_strided_slice %293 {offsets = [0, 0], sizes = [1, 128], strides = [1, 1]} : vector<8x128xf32> to vector<1x128xf32>
    %297 = vector.broadcast %295 : vector<8x1xf32> to vector<8x128xf32>
    %298 = vector.broadcast %296 : vector<1x128xf32> to vector<8x128xf32>
    %299 = arith.mulf %297, %298 : vector<8x128xf32>
    %300 = arith.addf %290, %299 : vector<8x128xf32>
    %301 = vector.extract_strided_slice %230 {offsets = [2, 0, 1], sizes = [1, 8, 1], strides = [1, 1, 1]} : vector<3x8x8xf32> to vector<1x8x1xf32>
    %302 = vector.shape_cast %301 : vector<1x8x1xf32> to vector<8x1xf32>
    %303 = vector.extract_strided_slice %293 {offsets = [1, 0], sizes = [1, 128], strides = [1, 1]} : vector<8x128xf32> to vector<1x128xf32>
    %304 = vector.broadcast %302 : vector<8x1xf32> to vector<8x128xf32>
    %305 = vector.broadcast %303 : vector<1x128xf32> to vector<8x128xf32>
    %306 = arith.mulf %304, %305 : vector<8x128xf32>
    %307 = arith.addf %300, %306 : vector<8x128xf32>
    %308 = vector.extract_strided_slice %230 {offsets = [2, 0, 2], sizes = [1, 8, 1], strides = [1, 1, 1]} : vector<3x8x8xf32> to vector<1x8x1xf32>
    %309 = vector.shape_cast %308 : vector<1x8x1xf32> to vector<8x1xf32>
    %310 = vector.extract_strided_slice %293 {offsets = [2, 0], sizes = [1, 128], strides = [1, 1]} : vector<8x128xf32> to vector<1x128xf32>
    %311 = vector.broadcast %309 : vector<8x1xf32> to vector<8x128xf32>
    %312 = vector.broadcast %310 : vector<1x128xf32> to vector<8x128xf32>
    %313 = arith.mulf %311, %312 : vector<8x128xf32>
    %314 = arith.addf %307, %313 : vector<8x128xf32>
    %315 = vector.extract_strided_slice %230 {offsets = [2, 0, 3], sizes = [1, 8, 1], strides = [1, 1, 1]} : vector<3x8x8xf32> to vector<1x8x1xf32>
    %316 = vector.shape_cast %315 : vector<1x8x1xf32> to vector<8x1xf32>
    %317 = vector.extract_strided_slice %293 {offsets = [3, 0], sizes = [1, 128], strides = [1, 1]} : vector<8x128xf32> to vector<1x128xf32>
    %318 = vector.broadcast %316 : vector<8x1xf32> to vector<8x128xf32>
    %319 = vector.broadcast %317 : vector<1x128xf32> to vector<8x128xf32>
    %320 = arith.mulf %318, %319 : vector<8x128xf32>
    %321 = arith.addf %314, %320 : vector<8x128xf32>
    %c0_46 = arith.constant 0 : index
    %c0_47 = arith.constant 0 : index
    %322 = vector.load %arg7[%c0_46, %c0_47] : memref<8x1xf32, #tpu.memory_space<vmem>>, vector<8x1xf32>
    %323 = vector.broadcast %322 : vector<8x1xf32> to vector<8x128xf32>
    %324 = arith.addf %321, %323 : vector<8x128xf32>
    %325 = vector.broadcast %9 : vector<1x128xf32> to vector<8x128xf32>
    %326 = arith.mulf %324, %325 : vector<8x128xf32>
    %c0_48 = arith.constant 0 : index
    %c0_49 = arith.constant 0 : index
    %327 = vector.load %arg8[%c0_48, %c0_49] : memref<8x1xf32, #tpu.memory_space<vmem>>, vector<8x1xf32>
    %c0_50 = arith.constant 0 : index
    %c0_51 = arith.constant 0 : index
    %328 = vector.load %arg9[%c0_50, %c0_51] : memref<8x1xf32, #tpu.memory_space<vmem>>, vector<8x1xf32>
    %cst_52 = arith.constant dense<0.000000e+00> : vector<8xf32>
    %329 = vector.multi_reduction <add>, %326, %cst_52 [1] : vector<8x128xf32> to vector<8xf32>
    %330 = vector.shape_cast %329 : vector<8xf32> to vector<8x1xf32>
    %cst_53 = arith.constant 0.000000e+00 : f32
    %331 = vector.broadcast %cst_53 : f32 to vector<8x1xf32>
    %332 = arith.mulf %330, %17 : vector<8x1xf32>
    %cst_54 = arith.constant dense<0.000000e+00> : vector<1xf32>
    %333 = vector.multi_reduction <add>, %332, %cst_54 [0] : vector<8x1xf32> to vector<1xf32>
    %334 = vector.shape_cast %333 : vector<1xf32> to vector<1x1xf32>
    %cst_55 = arith.constant 6.250000e-02 : f32
    %335 = vector.broadcast %cst_55 : f32 to vector<1x1xf32>
    %336 = arith.mulf %334, %335 : vector<1x1xf32>
    %337 = vector.broadcast %336 : vector<1x1xf32> to vector<8x1xf32>
    %338 = arith.mulf %17, %337 : vector<8x1xf32>
    %339 = arith.addf %331, %338 : vector<8x1xf32>
    %340 = arith.mulf %330, %24 : vector<8x1xf32>
    %cst_56 = arith.constant dense<0.000000e+00> : vector<1xf32>
    %341 = vector.multi_reduction <add>, %340, %cst_56 [0] : vector<8x1xf32> to vector<1xf32>
    %342 = vector.shape_cast %341 : vector<1xf32> to vector<1x1xf32>
    %cst_57 = arith.constant 6.250000e-02 : f32
    %343 = vector.broadcast %cst_57 : f32 to vector<1x1xf32>
    %344 = arith.mulf %342, %343 : vector<1x1xf32>
    %345 = vector.broadcast %344 : vector<1x1xf32> to vector<8x1xf32>
    %346 = arith.mulf %24, %345 : vector<8x1xf32>
    %347 = arith.addf %339, %346 : vector<8x1xf32>
    %348 = arith.mulf %330, %31 : vector<8x1xf32>
    %cst_58 = arith.constant dense<0.000000e+00> : vector<1xf32>
    %349 = vector.multi_reduction <add>, %348, %cst_58 [0] : vector<8x1xf32> to vector<1xf32>
    %350 = vector.shape_cast %349 : vector<1xf32> to vector<1x1xf32>
    %cst_59 = arith.constant 6.250000e-02 : f32
    %351 = vector.broadcast %cst_59 : f32 to vector<1x1xf32>
    %352 = arith.mulf %350, %351 : vector<1x1xf32>
    %353 = vector.broadcast %352 : vector<1x1xf32> to vector<8x1xf32>
    %354 = arith.mulf %31, %353 : vector<8x1xf32>
    %355 = arith.addf %347, %354 : vector<8x1xf32>
    %356 = arith.mulf %330, %38 : vector<8x1xf32>
    %cst_60 = arith.constant dense<0.000000e+00> : vector<1xf32>
    %357 = vector.multi_reduction <add>, %356, %cst_60 [0] : vector<8x1xf32> to vector<1xf32>
    %358 = vector.shape_cast %357 : vector<1xf32> to vector<1x1xf32>
    %cst_61 = arith.constant 6.250000e-02 : f32
    %359 = vector.broadcast %cst_61 : f32 to vector<1x1xf32>
    %360 = arith.mulf %358, %359 : vector<1x1xf32>
    %361 = vector.broadcast %360 : vector<1x1xf32> to vector<8x1xf32>
    %362 = arith.mulf %38, %361 : vector<8x1xf32>
    %363 = arith.addf %355, %362 : vector<8x1xf32>
    %364 = vector.broadcast %363 : vector<8x1xf32> to vector<8x128xf32>
    %365 = arith.subf %326, %364 : vector<8x128xf32>
    %366 = vector.broadcast %9 : vector<1x128xf32> to vector<8x128xf32>
    %367 = arith.mulf %365, %366 : vector<8x128xf32>
    %368 = arith.mulf %367, %367 : vector<8x128xf32>
    %cst_62 = arith.constant dense<0.000000e+00> : vector<8xf32>
    %369 = vector.multi_reduction <add>, %368, %cst_62 [1] : vector<8x128xf32> to vector<8xf32>
    %370 = vector.shape_cast %369 : vector<8xf32> to vector<8x1xf32>
    %cst_63 = arith.constant 0.000000e+00 : f32
    %371 = vector.broadcast %cst_63 : f32 to vector<8x1xf32>
    %372 = arith.mulf %370, %17 : vector<8x1xf32>
    %cst_64 = arith.constant dense<0.000000e+00> : vector<1xf32>
    %373 = vector.multi_reduction <add>, %372, %cst_64 [0] : vector<8x1xf32> to vector<1xf32>
    %374 = vector.shape_cast %373 : vector<1xf32> to vector<1x1xf32>
    %cst_65 = arith.constant 6.250000e-02 : f32
    %375 = vector.broadcast %cst_65 : f32 to vector<1x1xf32>
    %376 = arith.mulf %374, %375 : vector<1x1xf32>
    %377 = vector.broadcast %376 : vector<1x1xf32> to vector<8x1xf32>
    %378 = arith.mulf %17, %377 : vector<8x1xf32>
    %379 = arith.addf %371, %378 : vector<8x1xf32>
    %380 = arith.mulf %370, %24 : vector<8x1xf32>
    %cst_66 = arith.constant dense<0.000000e+00> : vector<1xf32>
    %381 = vector.multi_reduction <add>, %380, %cst_66 [0] : vector<8x1xf32> to vector<1xf32>
    %382 = vector.shape_cast %381 : vector<1xf32> to vector<1x1xf32>
    %cst_67 = arith.constant 6.250000e-02 : f32
    %383 = vector.broadcast %cst_67 : f32 to vector<1x1xf32>
    %384 = arith.mulf %382, %383 : vector<1x1xf32>
    %385 = vector.broadcast %384 : vector<1x1xf32> to vector<8x1xf32>
    %386 = arith.mulf %24, %385 : vector<8x1xf32>
    %387 = arith.addf %379, %386 : vector<8x1xf32>
    %388 = arith.mulf %370, %31 : vector<8x1xf32>
    %cst_68 = arith.constant dense<0.000000e+00> : vector<1xf32>
    %389 = vector.multi_reduction <add>, %388, %cst_68 [0] : vector<8x1xf32> to vector<1xf32>
    %390 = vector.shape_cast %389 : vector<1xf32> to vector<1x1xf32>
    %cst_69 = arith.constant 6.250000e-02 : f32
    %391 = vector.broadcast %cst_69 : f32 to vector<1x1xf32>
    %392 = arith.mulf %390, %391 : vector<1x1xf32>
    %393 = vector.broadcast %392 : vector<1x1xf32> to vector<8x1xf32>
    %394 = arith.mulf %31, %393 : vector<8x1xf32>
    %395 = arith.addf %387, %394 : vector<8x1xf32>
    %396 = arith.mulf %370, %38 : vector<8x1xf32>
    %cst_70 = arith.constant dense<0.000000e+00> : vector<1xf32>
    %397 = vector.multi_reduction <add>, %396, %cst_70 [0] : vector<8x1xf32> to vector<1xf32>
    %398 = vector.shape_cast %397 : vector<1xf32> to vector<1x1xf32>
    %cst_71 = arith.constant 6.250000e-02 : f32
    %399 = vector.broadcast %cst_71 : f32 to vector<1x1xf32>
    %400 = arith.mulf %398, %399 : vector<1x1xf32>
    %401 = vector.broadcast %400 : vector<1x1xf32> to vector<8x1xf32>
    %402 = arith.mulf %38, %401 : vector<8x1xf32>
    %403 = arith.addf %395, %402 : vector<8x1xf32>
    %cst_72 = arith.constant 9.99999974E-6 : f32
    %404 = vector.broadcast %cst_72 : f32 to vector<8x1xf32>
    %405 = arith.addf %403, %404 : vector<8x1xf32>
    %406 = math.rsqrt %405 : vector<8x1xf32>
    %407 = arith.mulf %327, %406 : vector<8x1xf32>
    %408 = arith.mulf %363, %407 : vector<8x1xf32>
    %409 = arith.subf %328, %408 : vector<8x1xf32>
    %410 = vector.broadcast %407 : vector<8x1xf32> to vector<8x128xf32>
    %411 = arith.mulf %326, %410 : vector<8x128xf32>
    %412 = vector.broadcast %409 : vector<8x1xf32> to vector<8x128xf32>
    %413 = arith.addf %411, %412 : vector<8x128xf32>
    %414 = arith.addf %413, %1 : vector<8x128xf32>
    %cst_73 = arith.constant 0.000000e+00 : f32
    %415 = vector.broadcast %cst_73 : f32 to vector<8x128xf32>
    %416 = arith.cmpf ogt, %414, %415 : vector<8x128xf32>
    %cst_74 = arith.constant 0.00999999977 : f32
    %417 = vector.broadcast %cst_74 : f32 to vector<8x128xf32>
    %418 = arith.mulf %417, %414 : vector<8x128xf32>
    %419 = arith.select %416, %414, %418 : vector<8x128xi1>, vector<8x128xf32>
    %c0_75 = arith.constant 0 : index
    %c0_76 = arith.constant 0 : index
    %c0_77 = arith.constant 0 : index
    %420 = vector.load %arg10[%c0_75, %c0_76, %c0_77] : memref<1x8x128xf32, #tpu.memory_space<vmem>>, vector<1x8x128xf32>
    %421 = vector.shape_cast %420 : vector<1x8x128xf32> to vector<8x128xf32>
    %422 = vector.shape_cast %419 : vector<8x128xf32> to vector<1x8x128xf32>
    tpu.vector_store %arg10[%c0_75, %c0_76, %c0_77], %422 {strides = array<i32>} : memref<1x8x128xf32, #tpu.memory_space<vmem>>, vector<1x8x128xf32>,
    return
  }
  func.func @transform_0(%arg0: i32) -> (i32, i32, i32) {
    %c0_i32 = arith.constant 0 : i32
    %c0_i32_0 = arith.constant 0 : i32
    %c0_i32_1 = arith.constant 0 : i32
    return %arg0, %c0_i32, %c0_i32_0 : i32, i32, i32
  }
  func.func @transform_1(%arg0: i32) -> (i32, i32, i32) {
    %c0_i32 = arith.constant 0 : i32
    %c0_i32_0 = arith.constant 0 : i32
    %c0_i32_1 = arith.constant 0 : i32
    %c0_i32_2 = arith.constant 0 : i32
    return %c0_i32, %c0_i32_0, %c0_i32_1 : i32, i32, i32
  }
  func.func @transform_2(%arg0: i32) -> (i32, i32) {
    %c0_i32 = arith.constant 0 : i32
    %c0_i32_0 = arith.constant 0 : i32
    %c0_i32_1 = arith.constant 0 : i32
    return %c0_i32, %c0_i32_0 : i32, i32
  }
  func.func @transform_3(%arg0: i32) -> (i32, i32) {
    %c0_i32 = arith.constant 0 : i32
    %c0_i32_0 = arith.constant 0 : i32
    %c0_i32_1 = arith.constant 0 : i32
    return %c0_i32, %c0_i32_0 : i32, i32
  }
  func.func @transform_4(%arg0: i32) -> (i32, i32) {
    %c0_i32 = arith.constant 0 : i32
    %c0_i32_0 = arith.constant 0 : i32
    %c0_i32_1 = arith.constant 0 : i32
    return %c0_i32, %c0_i32_0 : i32, i32
  }
  func.func @transform_5(%arg0: i32) -> (i32, i32, i32) {
    %c0_i32 = arith.constant 0 : i32
    %c0_i32_0 = arith.constant 0 : i32
    %c0_i32_1 = arith.constant 0 : i32
    %c0_i32_2 = arith.constant 0 : i32
    return %c0_i32, %c0_i32_0, %c0_i32_1 : i32, i32, i32
  }
  func.func @transform_6(%arg0: i32) -> (i32, i32) {
    %c0_i32 = arith.constant 0 : i32
    %c0_i32_0 = arith.constant 0 : i32
    %c0_i32_1 = arith.constant 0 : i32
    return %c0_i32, %c0_i32_0 : i32, i32
  }
  func.func @transform_7(%arg0: i32) -> (i32, i32) {
    %c0_i32 = arith.constant 0 : i32
    %c0_i32_0 = arith.constant 0 : i32
    %c0_i32_1 = arith.constant 0 : i32
    return %c0_i32, %c0_i32_0 : i32, i32
  }
  func.func @transform_8(%arg0: i32) -> (i32, i32) {
    %c0_i32 = arith.constant 0 : i32
    %c0_i32_0 = arith.constant 0 : i32
    %c0_i32_1 = arith.constant 0 : i32
    return %c0_i32, %c0_i32_0 : i32, i32
  }
  func.func @transform_9(%arg0: i32) -> (i32, i32, i32) {
    %c0_i32 = arith.constant 0 : i32
    %c0_i32_0 = arith.constant 0 : i32
    %c0_i32_1 = arith.constant 0 : i32
    return %arg0, %c0_i32, %c0_i32_0 : i32, i32, i32
  }
}

</mosaic_0001>

<bundles_post_ra>
// kernel: residual_conv_block.1
= control target key start
LH: loop header
LB: loop body
LE: loop exit
PB: predicated region body
PF: predicated region fallthrough
CT: control target
= control target key end

     0   :  { %s989_s30 = smov 0   ;;  %s1152_s0 = inlined_call_operand.vmem [shape: f32[2,8,128], index: 0, kind: input, shape index: {}]   ;;  %s1153_s1 = inlined_call_operand.vmem [shape: f32[3,8,8], index: 1, kind: input, shape index: {}]   ;;  %s1154_s2 = inlined_call_operand.vmem [shape: f32[8,1], index: 2, kind: input, shape index: {}]   ;;  %s1155_s3 = inlined_call_operand.vmem [shape: f32[8,1], index: 3, kind: input, shape index: {}]   ;;  %s1156_s4 = inlined_call_operand.vmem [shape: f32[8,1], index: 4, kind: input, shape index: {}]   ;;  %s1157_s5 = inlined_call_operand.vmem [shape: f32[3,8,8], index: 5, kind: input, shape index: {}]   ;;  %s1158_s6 = inlined_call_operand.vmem [shape: f32[8,1], index: 6, kind: input, shape index: {}]   ;;  %s1159_s7 = inlined_call_operand.vmem [shape: f32[8,1], index: 7, kind: input, shape index: {}]   ;;  %s1160_s8 = inlined_call_operand.vmem [shape: f32[8,1], index: 8, kind: input, shape index: {}]   ;;  %s1161_s9 = inlined_call_operand.vmem [shape: f32[2,8,128], index: 9, kind: output, shape index: {}]  }
   0x1 LB: > { %s866_s10 = sadd.s32 4294967295, %s930_s30   ;;  %p870_p0 = scmp.ge.s32.totalorder %s930_s30, 1  ;;  %s930_s30 = sphi %s989_s30, %s19_s30  }
   0x2   : > { %p286_p1 = scmp.lt.s32.totalorder %s930_s30, 3 }
   0x4   : > { %p287_p2 = pnand %p870_p0, %p286_p1 }
   0x5   : > { %p320_p3 = scmp.lt.s32.totalorder (!%p287_p2), %s866_s10, 1  ;;  %s935_s17 = smov (!%p287_p2), 1  }
   0x6   : > { %290 = sbr.rel (%p287_p2) target bundleno = 1179 (0x49b), region = 56  ;;  %s937_s20 = smov (!%p287_p2), 127  }
   0xb   : > { %v358_v0 = vld [vmem:[%s1153_s1] sm:$0xff]  ;;  %v932_v1 = vmov 1   ;;  %v933_v2 = vmov 0   ;;  %s1163_s10 = smov (!%p320_p3, %s866_s10), 1  ;;  %v934_v3 = vmov 3   ;;  %v936_v5 = vmov 2  }
   0xc   : > { %896 = vset.pattern.permute.xlu1 %v932_v1  ;;  %895 = vset.pattern.permute.xlu0 %v933_v2  ;;  %s871_s13 = sshll.u32 %s1163_s10, 3  ;;  %v359_v6 = vld [vmem:[%s1153_s1 + $0x8] sm:$0xff]  ;;  %v360_v7 = vld [vmem:[%s1153_s1 + $0x10] sm:$0xff]  ;;  %v459_v8 = vld [vmem:[%s1154_s2] sm:$0xff]  ;;  %vm365_vm0 = vcmask 7168   ;;  %v329_v18 = vlaneseq  ;;  %v938_v27 = vmov 0.0  }
   0xd   : > { %376 = vperm.xlu1 %896, %v358_v0   ;;  %898 = vset.pattern.permute.xlu2 %v934_v3  ;;  %s323_s16 = scalar_lea.vmem %s1152_s0, %s871_s13  ;;  %vm428_vm11 = vcmask 1039360   ;;  %s327_s25 = scalar_lea.vmem %s1161_s9, %s871_s13 }
   0xe   : > { %390 = vperm.xlu2 %898, %v358_v0   ;;  %v1011_v4 = vld [vmem:[%s323_s16] sm:$0xff]  ;;  %v337_v21 = vshrl.u32 %v329_v18, 7  ;;  %v330_v59 = vand.u32 127, %v329_v18 }
   0xf   : > { %362 = vrot.lane.b32.xlu0 %v1011_v4, %s935_s17  ;;  %v401_v19 = vperm.slane %v1011_v4, 0  ;;  %v408_v33 = vperm.slane %v1011_v4, 1  ;;  %v415_v38 = vperm.slane %v1011_v4, 2  ;;  %v422_v46 = vperm.slane %v1011_v4, 3 }
  0x10   : > { %vm339_vm1 = vcmp.lt.s32.totalorder %v337_v21, 1  ;;  %vm343_vm2 = vcmp.ge.s32.totalorder %v337_v21, 1  ;;  %vm344_vm3 = vcmp.lt.s32.totalorder %v337_v21, 2  ;;  %vm348_vm5 = vcmp.ge.s32.totalorder %v337_v21, 2 }
  0x11   : > { %v1040_v28 = vsel %vm339_vm1, 1.0, %v938_v27  ;;  %vm345_vm4 = vmand %vm343_vm2, %vm344_vm3  ;;  %vm349_vm6 = vcmp.lt.s32.totalorder %v337_v21, 3  ;;  %vm353_vm8 = vcmp.ge.s32.totalorder %v337_v21, 3  ;;  %vm354_vm9 = vcmp.lt.s32.totalorder %v337_v21, 4 }
  0x12   : > { %v1042_v29 = vsel %vm345_vm4, 1.0, %v938_v27  ;;  %vm350_vm7 = vmand %vm348_vm5, %vm349_vm6  ;;  %vm331_vm12 = vcmp.ge.s32.totalorder %v330_v59, 1  ;;  %vm332_vm13 = vcmp.lt.s32.totalorder %v330_v59, 17 }
  0x13   : > { %v1045_v34 = vsel %vm350_vm7, 1.0, %v938_v27  ;;  %vm355_vm10 = vmand %vm353_vm8, %vm354_vm9 }
  0x14   : > { %v1047_v36 = vsel %vm355_vm10, 1.0, %v938_v27  ;;  %vm333_vm14 = vmand %vm331_vm12, %vm332_vm13 }
  0x15   : > { %897 = vset.pattern.permute.xlu1 %v936_v5 }
  0x16   : > { %383 = vperm.xlu1 %897, %v358_v0   ;;  %899 = vset.pattern.permute.xlu2 %v933_v2 }
  0x17   : > { %398 = vperm.xlu2 %899, %v359_v6   ;;  %369 = vperm.xlu0 %895, %v358_v0  }
  0x1e   : > { %900 = vset.pattern.permute.xlu1 %v932_v1 }
  0x1f   : > { %405 = vperm.xlu1 %900, %v359_v6   ;;  %901 = vset.pattern.permute.xlu2 %v936_v5 }
  0x20   : > { %412 = vperm.xlu2 %901, %v359_v6   ;;  %425 = vrot.lane.b32.xlu0 %v1011_v4, %s937_s20 }
  0x21   : > { %904 = vset.pattern.permute.xlu0 %v932_v1 }
  0x27   : > { %902 = vset.pattern.permute.xlu1 %v934_v3 }
  0x28   : > { %419 = vperm.xlu1 %902, %v359_v6   ;;  %903 = vset.pattern.permute.xlu2 %v933_v2 }
  0x29   : > { %432 = vperm.xlu2 %903, %v360_v7   ;;  %439 = vperm.xlu0 %904, %v360_v7  }
  0x30   : > { %905 = vset.pattern.permute.xlu1 %v936_v5 }
  0x31   : > { %446 = vperm.xlu1 %905, %v360_v7   ;;  %906 = vset.pattern.permute.xlu2 %v934_v3 }
  0x32   : > { %453 = vperm.xlu2 %906, %v360_v7   ;;  %911 = vset.pattern.permute.xlu0 %v933_v2 }
  0x39   : > { %907 = vset.pattern.permute.xlu1 %v933_v2 }
  0x3a   : > { %462 = vperm.xlu1 %907, %v459_v8   ;;  %909 = vset.pattern.permute.xlu2 %v936_v5 }
  0x68   : > { %v391_v9 = vpop.permute.xlu2 %390 }
  0x71   : > { %v399_v13 = vpop.permute.xlu2 %398 }
  0x72   : > { %v402_v37 = vmul.f32 %v401_v19, %v399_v13 }
  0x7a   : > { %v413_v35 = vpop.permute.xlu2 %412 }
  0x7b   : > { %v416_v44 = vmul.f32 %v415_v38, %v413_v35 }
  0x7f   : > { %v377_v10 = vpop.permute.xlu1 %376 }
  0x81   : > { %v363_v11 = vpop.permute.xlu0 %362 }
  0x82   : > { %v366_v12 = vsel %vm365_vm0, 0.0, %v363_v11 }
  0x83   : > { %v379_v15 = vperm.slane %v366_v12, 1  ;;  %v386_v16 = vperm.slane %v366_v12, 2  ;;  %v372_v17 = vperm.slane %v366_v12, 0  ;;  %v393_v22 = vperm.slane %v366_v12, 3  ;;  %v433_v51 = vpop.permute.xlu2 %432 }
  0x85   : > { %v380_v24 = vmul.f32 %v379_v15, %v377_v10  ;;  %v394_v30 = vmul.f32 %v393_v22, %v391_v9  ;;  %v1052_v10 = vsel %vm333_vm14, 1.0, %v938_v27 }
  0x88   : > { %v384_v14 = vpop.permute.xlu1 %383 }
  0x89   : > { %v370_v20 = vpop.permute.xlu0 %369  ;;  %v387_v23 = vmul.f32 %v386_v16, %v384_v14 }
  0x8a   : > { %v373_v25 = vmul.f32 %v372_v17, %v370_v20 }
  0x8c   : > { %v381_v26 = vadd.f32 %v380_v24, %v373_v25  ;;  %v454_v0 = vpop.permute.xlu2 %453 }
  0x8e   : > { %v388_v31 = vadd.f32 %v387_v23, %v381_v26 }
  0x90   : > { %v395_v39 = vadd.f32 %v394_v30, %v388_v31 }
  0x91   : > { %v406_v32 = vpop.permute.xlu1 %405 }
  0x92   : > { %v426_v40 = vpop.permute.xlu0 %425  ;;  %v403_v41 = vadd.f32 %v402_v37, %v395_v39  ;;  %v409_v42 = vmul.f32 %v408_v33, %v406_v32 }
  0x93   : > { %v429_v43 = vsel %vm428_vm11, %v426_v40, 0.0 }
  0x94   : > { %v410_v45 = vadd.f32 %v409_v42, %v403_v41  ;;  %v435_v47 = vperm.slane %v429_v43, 0  ;;  %v442_v54 = vperm.slane %v429_v43, 1  ;;  %v449_v58 = vperm.slane %v429_v43, 2 }
  0x95   : > { %v456_v63 = vperm.slane %v429_v43, 3 }
  0x96   : > { %v417_v49 = vadd.f32 %v416_v44, %v410_v45  ;;  %v436_v52 = vmul.f32 %v435_v47, %v433_v51 }
  0x97   : > { %v457_v7 = vmul.f32 %v456_v63, %v454_v0 }
  0x9a   : > { %v420_v48 = vpop.permute.xlu1 %419 }
  0x9b   : > { %v423_v50 = vmul.f32 %v422_v46, %v420_v48  ;;  %v440_v55 = vpop.permute.xlu0 %439 }
  0x9c   : > { %v443_v57 = vmul.f32 %v442_v54, %v440_v55 }
  0x9d   : > { %v424_v53 = vadd.f32 %v423_v50, %v417_v49 }
  0x9f   : > { %v437_v56 = vadd.f32 %v436_v52, %v424_v53 }
  0xa1   : > { %v444_v62 = vadd.f32 %v443_v57, %v437_v56 }
  0xa3   : > { %v447_v60 = vpop.permute.xlu1 %446 }
  0xa4   : > { %v450_v61 = vmul.f32 %v449_v58, %v447_v60 }
  0xa6   : > { %v451_v6 = vadd.f32 %v450_v61, %v444_v62 }
  0xa8   : > { %v458_v8 = vadd.f32 %v457_v7, %v451_v6 }
  0xac   : > { %v463_v9 = vpop.permute.xlu1 %462 }
  0xad   : > { %v465_v11 = vadd.f32 %v463_v9, %v458_v8 }
  0xaf   : > { %v1055_v12 = vmul.f32 %v1052_v10, %v465_v11 }
  0xb1   : > { %469 = vadd.xlane.f32.xlu2 %v1055_v12 }
 0x124   : > { %v470_v13 = vpop.xlane.xlu2 %469 }
 0x125   : > { %v471_v14 = vmul.f32 %v1040_v28, %v470_v13  ;;  %v481_v15 = vmul.f32 %v1042_v29, %v470_v13  ;;  %v491_v16 = vmul.f32 %v1045_v34, %v470_v13  ;;  %v501_v17 = vmul.f32 %v1047_v36, %v470_v13 }
 0x127   : > { %v472_v18 = vrot.slane %v471_v14, 4  ;;  %v482_v19 = vrot.slane %v481_v15, 4  ;;  %v492_v20 = vrot.slane %v491_v16, 4  ;;  %v502_v21 = vrot.slane %v501_v17, 4 }
 0x129   : > { %v473_v22 = vadd.f32 %v472_v18, %v471_v14  ;;  %v483_v23 = vadd.f32 %v482_v19, %v481_v15  ;;  %v493_v24 = vadd.f32 %v492_v20, %v491_v16  ;;  %v503_v25 = vadd.f32 %v502_v21, %v501_v17 }
 0x12b   : > { %v474_v26 = vrot.slane %v473_v22, 2  ;;  %v484_v27 = vrot.slane %v483_v23, 2  ;;  %v494_v30 = vrot.slane %v493_v24, 2  ;;  %v504_v31 = vrot.slane %v503_v25, 2 }
 0x12d   : > { %v475_v32 = vadd.f32 %v474_v26, %v473_v22  ;;  %v485_v33 = vadd.f32 %v484_v27, %v483_v23  ;;  %v495_v35 = vadd.f32 %v494_v30, %v493_v24  ;;  %v505_v37 = vadd.f32 %v504_v31, %v503_v25 }
 0x12f   : > { %v476_v38 = vrot.slane %v475_v32, 1  ;;  %v486_v39 = vrot.slane %v485_v33, 1  ;;  %v496_v40 = vrot.slane %v495_v35, 1  ;;  %v506_v41 = vrot.slane %v505_v37, 1 }
 0x131   : > { %v477_v42 = vadd.f32 %v476_v38, %v475_v32  ;;  %v487_v43 = vadd.f32 %v486_v39, %v485_v33  ;;  %v497_v44 = vadd.f32 %v496_v40, %v495_v35  ;;  %v507_v45 = vadd.f32 %v506_v41, %v505_v37 }
 0x133   : > { %v478_v46 = vmul.f32 0.0625, %v477_v42  ;;  %v488_v47 = vmul.f32 0.0625, %v487_v43  ;;  %v498_v48 = vmul.f32 0.0625, %v497_v44  ;;  %v508_v51 = vmul.f32 0.0625, %v507_v45 }
 0x135   : > { %v479_v49 = vmul.f32 %v1040_v28, %v478_v46  ;;  %v489_v50 = vmul.f32 %v1042_v29, %v488_v47  ;;  %v499_v53 = vmul.f32 %v1045_v34, %v498_v48  ;;  %v509_v55 = vmul.f32 %v1047_v36, %v508_v51  ;;  %v586_v47 = vld [vmem:[%s1157_s5] sm:$0xff] }
 0x136   : > { %610 = vperm.xlu2 %909, %v586_v47  }
 0x137   : > { %v490_v52 = vadd.f32 %v489_v50, %v479_v49  ;;  %v587_v49 = vld [vmem:[%s1157_s5 + $0x8] sm:$0xff] }
 0x139   : > { %v500_v54 = vadd.f32 %v499_v53, %v490_v52 }
 0x13b   : > { %v1066_v56 = vadd.f32 %v509_v55, %v500_v54  ;;  %v467_v55 = vld [vmem:[%s1155_s3] sm:$0xff] }
 0x13d   : > { %v511_v57 = vsub.f32 %v1055_v12, %v1066_v56 }
 0x13e   : > { %915 = vset.pattern.permute.xlu2 %v933_v2 }
 0x13f   : > { %v512_v58 = vmul.f32 %v1052_v10, %v511_v57 }
 0x141   : > { %v513_v59 = vmul.f32 %v512_v58, %v512_v58 }
 0x143   : > { %514 = vadd.xlane.f32.xlu0 %v513_v59 }
 0x157   : > { %625 = vperm.xlu0 %911, %v587_v49  }
 0x1b6   : > { %v515_v60 = vpop.xlane.xlu0 %514 }
 0x1b7   : > { %v516_v61 = vmul.f32 %v1040_v28, %v515_v60  ;;  %v526_v62 = vmul.f32 %v1042_v29, %v515_v60  ;;  %v536_v63 = vmul.f32 %v1045_v34, %v515_v60  ;;  %v546_v0 = vmul.f32 %v1047_v36, %v515_v60 }
 0x1b9   : > { %v517_v6 = vrot.slane %v516_v61, 4  ;;  %v527_v7 = vrot.slane %v526_v62, 4  ;;  %v537_v8 = vrot.slane %v536_v63, 4  ;;  %v547_v9 = vrot.slane %v546_v0, 4 }
 0x1bb   : > { %v518_v11 = vadd.f32 %v517_v6, %v516_v61  ;;  %v528_v13 = vadd.f32 %v527_v7, %v526_v62  ;;  %v538_v14 = vadd.f32 %v537_v8, %v536_v63  ;;  %v548_v15 = vadd.f32 %v547_v9, %v546_v0  ;;  %v468_v61 = vld [vmem:[%s1156_s4] sm:$0xff] }
 0x1bd   : > { %v519_v16 = vrot.slane %v518_v11, 2  ;;  %v529_v17 = vrot.slane %v528_v13, 2  ;;  %v539_v18 = vrot.slane %v538_v14, 2  ;;  %v549_v19 = vrot.slane %v548_v15, 2 }
 0x1bf   : > { %v520_v20 = vadd.f32 %v519_v16, %v518_v11  ;;  %v530_v21 = vadd.f32 %v529_v17, %v528_v13  ;;  %v540_v22 = vadd.f32 %v539_v18, %v538_v14  ;;  %v550_v23 = vadd.f32 %v549_v19, %v548_v15  ;;  %v611_v16 = vpop.permute.xlu2 %610 }
 0x1c1   : > { %v521_v24 = vrot.slane %v520_v20, 1  ;;  %v531_v25 = vrot.slane %v530_v21, 1  ;;  %v541_v26 = vrot.slane %v540_v22, 1  ;;  %v551_v27 = vrot.slane %v550_v23, 1 }
 0x1c3   : > { %v522_v30 = vadd.f32 %v521_v24, %v520_v20  ;;  %v532_v31 = vadd.f32 %v531_v25, %v530_v21  ;;  %v542_v32 = vadd.f32 %v541_v26, %v540_v22  ;;  %v552_v33 = vadd.f32 %v551_v27, %v550_v23 }
 0x1c5   : > { %v523_v35 = vmul.f32 0.0625, %v522_v30  ;;  %v533_v37 = vmul.f32 0.0625, %v532_v31  ;;  %v543_v38 = vmul.f32 0.0625, %v542_v32  ;;  %v553_v41 = vmul.f32 0.0625, %v552_v33 }
 0x1c7   : > { %v524_v39 = vmul.f32 %v1040_v28, %v523_v35  ;;  %v534_v40 = vmul.f32 %v1042_v29, %v533_v37  ;;  %v544_v43 = vmul.f32 %v1045_v34, %v543_v38  ;;  %v554_v44 = vmul.f32 %v1047_v36, %v553_v41 }
 0x1c9   : > { %v535_v42 = vadd.f32 %v534_v40, %v524_v39  ;;  %v626_v27 = vpop.permute.xlu0 %625 }
 0x1cb   : > { %v545_v45 = vadd.f32 %v544_v43, %v535_v42 }
 0x1cd   : > { %v555_v46 = vadd.f32 %v554_v44, %v545_v45 }
 0x1cf   : > { %v556_v48 = vadd.f32 1e-05, %v555_v46 }
 0x1d1   : > { %920 = vrsqrt.f32 %v556_v48  ;;  %vm563_vm1 = vweird.f32 %v556_v48 }
 0x1d7   : > { %v921_v50 = vpop.eup %920 }
 0x1d8   : > { %v558_v51 = vmul.f32 %v921_v50, %v556_v48  ;;  %vm564_vm15 = vweird.f32 %v921_v50 }
 0x1d9   : > { %vm565_vm2 = vmor %vm563_vm1, %vm564_vm15 }
 0x1da   : > { %v559_v52 = vmul.f32 %v921_v50, %v558_v51 }
 0x1dc   : > { %v560_v53 = vmul.f32 0.5, %v559_v52 }
 0x1de   : > { %v561_v54 = vsub.f32 1.5, %v560_v53 }
 0x1e0   : > { %v562_v57 = vmul.f32 %v921_v50, %v561_v54 }
 0x1e2   : > { %v566_v58 = vsel %vm565_vm2, %v921_v50, %v562_v57 }
 0x1e3   : > { %v567_v59 = vmul.f32 %v566_v58, %v467_v55 }
 0x1e5   : > { %572 = vperm.xlu1 %907, %v567_v59   ;;  %v568_v60 = vmul.f32 %v567_v59, %v1066_v56  ;;  %v588_v56 = vld [vmem:[%s1157_s5 + $0x10] sm:$0xff] }
 0x1e6   : > { %658 = vperm.xlu2 %915, %v588_v56  }
 0x1e7   : > { %v569_v62 = vsub.f32 %v468_v61, %v568_v60 }
 0x1ed   : > { %578 = vperm.xlu1 %907, %v569_v62  }
 0x1ee   : > { %917 = vset.pattern.permute.xlu2 %v936_v5 }
 0x1f5   : > { %596 = vperm.xlu1 %907, %v586_v47  }
 0x1fd   : > { %908 = vset.pattern.permute.xlu1 %v932_v1 }
 0x1fe   : > { %603 = vperm.xlu1 %908, %v586_v47  }
 0x206   : > { %910 = vset.pattern.permute.xlu1 %v934_v3 }
 0x207   : > { %617 = vperm.xlu1 %910, %v586_v47  }
 0x20f   : > { %912 = vset.pattern.permute.xlu1 %v932_v1 }
 0x210   : > { %632 = vperm.xlu1 %912, %v587_v49  }
 0x218   : > { %913 = vset.pattern.permute.xlu1 %v936_v5  ;;  %v685_v5 = vld [vmem:[%s1158_s6] sm:$0xff] }
 0x219   : > { %639 = vperm.xlu1 %913, %v587_v49  }
 0x221   : > { %914 = vset.pattern.permute.xlu1 %v934_v3 }
 0x240   : > { %v659_v18 = vpop.permute.xlu2 %658 }
 0x257   : > { %v573_v63 = vpop.permute.xlu1 %572 }
 0x258   : > { %v575_v0 = vmul.f32 %v573_v63, %v1055_v12 }
 0x25f   : > { %v579_v6 = vpop.permute.xlu1 %578 }
 0x260   : > { %v581_v7 = vadd.f32 %v579_v6, %v575_v0 }
 0x262   : > { %vm582_vm3 = vcmp.gt.f32.partialorder %v581_v7, 0.0  ;;  %v583_v8 = vmul.f32 0.01, %v581_v7 }
 0x264   : > { %v584_v9 = vsel %vm582_vm3, %v581_v7, %v583_v8 }
 0x265   : > { %v585_v11 = vmul.f32 %v1052_v10, %v584_v9 }
 0x267   : > { %652 = vrot.lane.b32.xlu2 %v585_v11, %s937_s20  ;;  %590 = vrot.lane.b32.xlu1 %v585_v11, %s935_s17  ;;  %v597_v12 = vpop.permute.xlu1 %596  ;;  %v628_v25 = vperm.slane %v585_v11, 0  ;;  %v635_v37 = vperm.slane %v585_v11, 1  ;;  %v642_v41 = vperm.slane %v585_v11, 2  ;;  %v649_v45 = vperm.slane %v585_v11, 3 }
 0x269   : > { %v629_v35 = vmul.f32 %v628_v25, %v626_v27 }
 0x26f   : > { %672 = vperm.xlu2 %917, %v588_v56   ;;  %646 = vperm.xlu1 %914, %v587_v49  }
 0x270   : > { %v604_v13 = vpop.permute.xlu1 %603 }
 0x277   : > { %916 = vset.pattern.permute.xlu1 %v932_v1  ;;  %919 = vset.pattern.permute.xlu2 %v933_v2 }
 0x278   : > { %665 = vperm.xlu1 %916, %v588_v56   ;;  %688 = vperm.xlu2 %919, %v685_v5  }
 0x279   : > { %v618_v14 = vpop.permute.xlu1 %617 }
 0x280   : > { %918 = vset.pattern.permute.xlu1 %v934_v3 }
 0x281   : > { %679 = vperm.xlu1 %918, %v588_v56  }
 0x282   : > { %v633_v15 = vpop.permute.xlu1 %632 }
 0x283   : > { %v636_v40 = vmul.f32 %v635_v37, %v633_v15 }
 0x28b   : > { %v640_v17 = vpop.permute.xlu1 %639 }
 0x28c   : > { %v643_v43 = vmul.f32 %v642_v41, %v640_v17 }
 0x2c1   : > { %v653_v30 = vpop.permute.xlu2 %652 }
 0x2c2   : > { %v655_v39 = vsel %vm428_vm11, %v653_v30, 0.0 }
 0x2c3   : > { %v661_v44 = vperm.slane %v655_v39, 0  ;;  %v668_v52 = vperm.slane %v655_v39, 1  ;;  %v675_v57 = vperm.slane %v655_v39, 2  ;;  %v682_v60 = vperm.slane %v655_v39, 3 }
 0x2c5   : > { %v662_v51 = vmul.f32 %v661_v44, %v659_v18 }
 0x2c9   : > { %v673_v53 = vpop.permute.xlu2 %672 }
 0x2ca   : > { %v676_v59 = vmul.f32 %v675_v57, %v673_v53 }
 0x2d2   : > { %v689_v63 = vpop.permute.xlu2 %688 }
 0x2d9   : > { %v591_v19 = vpop.permute.xlu1 %590 }
 0x2da   : > { %v593_v20 = vsel %vm365_vm0, 0.0, %v591_v19 }
 0x2db   : > { %v599_v21 = vperm.slane %v593_v20, 0  ;;  %v606_v22 = vperm.slane %v593_v20, 1  ;;  %v613_v1 = vperm.slane %v593_v20, 2  ;;  %v620_v24 = vperm.slane %v593_v20, 3 }
 0x2dd   : > { %v600_v23 = vmul.f32 %v599_v21, %v597_v12  ;;  %v607_v2 = vmul.f32 %v606_v22, %v604_v13  ;;  %v614_v3 = vmul.f32 %v613_v1, %v611_v16  ;;  %v621_v32 = vmul.f32 %v620_v24, %v618_v14 }
 0x2df   : > { %v608_v26 = vadd.f32 %v607_v2, %v600_v23 }
 0x2e1   : > { %v615_v31 = vadd.f32 %v614_v3, %v608_v26  ;;  %v647_v33 = vpop.permute.xlu1 %646 }
 0x2e2   : > { %v650_v48 = vmul.f32 %v649_v45, %v647_v33 }
 0x2e3   : > { %v622_v38 = vadd.f32 %v621_v32, %v615_v31 }
 0x2e5   : > { %v630_v42 = vadd.f32 %v629_v35, %v622_v38 }
 0x2e7   : > { %v637_v46 = vadd.f32 %v636_v40, %v630_v42 }
 0x2e9   : > { %v644_v47 = vadd.f32 %v643_v43, %v637_v46 }
 0x2ea   : > { %v666_v49 = vpop.permute.xlu1 %665 }
 0x2eb   : > { %v651_v50 = vadd.f32 %v650_v48, %v644_v47  ;;  %v669_v55 = vmul.f32 %v668_v52, %v666_v49 }
 0x2ed   : > { %v663_v54 = vadd.f32 %v662_v51, %v651_v50 }
 0x2ef   : > { %v670_v58 = vadd.f32 %v669_v55, %v663_v54 }
 0x2f1   : > { %v677_v56 = vadd.f32 %v676_v59, %v670_v58 }
 0x2f3   : > { %v680_v61 = vpop.permute.xlu1 %679 }
 0x2f4   : > { %v683_v62 = vmul.f32 %v682_v60, %v680_v61 }
 0x2f6   : > { %v684_v0 = vadd.f32 %v683_v62, %v677_v56 }
 0x2f8   : > { %v691_v6 = vadd.f32 %v689_v63, %v684_v0 }
 0x2fa   : > { %v1115_v7 = vmul.f32 %v1052_v10, %v691_v6 }
 0x2fc   : > { %695 = vadd.xlane.f32.xlu0 %v1115_v7 }
 0x36f   : > { %v696_v8 = vpop.xlane.xlu0 %695 }
 0x370   : > { %v697_v9 = vmul.f32 %v1040_v28, %v696_v8  ;;  %v707_v11 = vmul.f32 %v1042_v29, %v696_v8  ;;  %v717_v5 = vmul.f32 %v1045_v34, %v696_v8  ;;  %v727_v12 = vmul.f32 %v1047_v36, %v696_v8 }
 0x372   : > { %v698_v13 = vrot.slane %v697_v9, 4  ;;  %v708_v14 = vrot.slane %v707_v11, 4  ;;  %v718_v15 = vrot.slane %v717_v5, 4  ;;  %v728_v16 = vrot.slane %v727_v12, 4 }
 0x374   : > { %v699_v17 = vadd.f32 %v698_v13, %v697_v9  ;;  %v709_v18 = vadd.f32 %v708_v14, %v707_v11  ;;  %v719_v19 = vadd.f32 %v718_v15, %v717_v5  ;;  %v729_v20 = vadd.f32 %v728_v16, %v727_v12 }
 0x376   : > { %v700_v21 = vrot.slane %v699_v17, 2  ;;  %v710_v22 = vrot.slane %v709_v18, 2  ;;  %v720_v1 = vrot.slane %v719_v19, 2  ;;  %v730_v23 = vrot.slane %v729_v20, 2 }
 0x378   : > { %v701_v2 = vadd.f32 %v700_v21, %v699_v17  ;;  %v711_v24 = vadd.f32 %v710_v22, %v709_v18  ;;  %v721_v25 = vadd.f32 %v720_v1, %v719_v19  ;;  %v731_v26 = vadd.f32 %v730_v23, %v729_v20 }
 0x37a   : > { %v702_v3 = vrot.slane %v701_v2, 1  ;;  %v712_v27 = vrot.slane %v711_v24, 1  ;;  %v722_v30 = vrot.slane %v721_v25, 1  ;;  %v732_v31 = vrot.slane %v731_v26, 1 }
 0x37c   : > { %v703_v32 = vadd.f32 %v702_v3, %v701_v2  ;;  %v713_v33 = vadd.f32 %v712_v27, %v711_v24  ;;  %v723_v35 = vadd.f32 %v722_v30, %v721_v25  ;;  %v733_v37 = vadd.f32 %v732_v31, %v731_v26 }
 0x37e   : > { %v704_v38 = vmul.f32 0.0625, %v703_v32  ;;  %v714_v39 = vmul.f32 0.0625, %v713_v33  ;;  %v724_v40 = vmul.f32 0.0625, %v723_v35  ;;  %v734_v43 = vmul.f32 0.0625, %v733_v37 }
 0x380   : > { %v705_v41 = vmul.f32 %v1040_v28, %v704_v38  ;;  %v715_v42 = vmul.f32 %v1042_v29, %v714_v39  ;;  %v725_v45 = vmul.f32 %v1045_v34, %v724_v40  ;;  %v735_v47 = vmul.f32 %v1047_v36, %v734_v43 }
 0x382   : > { %v716_v44 = vadd.f32 %v715_v42, %v705_v41  ;;  %v694_v41 = vld [vmem:[%s1160_s8] sm:$0xff] }
 0x384   : > { %v726_v46 = vadd.f32 %v725_v45, %v716_v44 }
 0x386   : > { %v736_v48 = vadd.f32 %v735_v47, %v726_v46 }
 0x388   : > { %v737_v49 = vsub.f32 %v1115_v7, %v736_v48 }
 0x38a   : > { %v738_v50 = vmul.f32 %v1052_v10, %v737_v49 }
 0x38c   : > { %v739_v51 = vmul.f32 %v738_v50, %v738_v50 }
 0x38e   : > { %740 = vadd.xlane.f32.xlu1 %v739_v51 }
 0x401   : > { %v741_v52 = vpop.xlane.xlu1 %740 }
 0x402   : > { %v742_v53 = vmul.f32 %v1040_v28, %v741_v52  ;;  %v752_v54 = vmul.f32 %v1042_v29, %v741_v52  ;;  %v762_v55 = vmul.f32 %v1045_v34, %v741_v52  ;;  %v772_v57 = vmul.f32 %v1047_v36, %v741_v52 }
 0x404   : > { %v743_v58 = vrot.slane %v742_v53, 4  ;;  %v753_v59 = vrot.slane %v752_v54, 4  ;;  %v763_v60 = vrot.slane %v762_v55, 4  ;;  %v773_v61 = vrot.slane %v772_v57, 4 }
 0x406   : > { %v744_v62 = vadd.f32 %v743_v58, %v742_v53  ;;  %v754_v56 = vadd.f32 %v753_v59, %v752_v54  ;;  %v764_v63 = vadd.f32 %v763_v60, %v762_v55  ;;  %v774_v0 = vadd.f32 %v773_v61, %v772_v57 }
 0x408   : > { %v745_v10 = vrot.slane %v744_v62, 2  ;;  %v755_v6 = vrot.slane %v754_v56, 2  ;;  %v765_v8 = vrot.slane %v764_v63, 2  ;;  %v775_v9 = vrot.slane %v774_v0, 2 }
 0x40a   : > { %v746_v11 = vadd.f32 %v745_v10, %v744_v62  ;;  %v756_v5 = vadd.f32 %v755_v6, %v754_v56  ;;  %v766_v12 = vadd.f32 %v765_v8, %v764_v63  ;;  %v776_v13 = vadd.f32 %v775_v9, %v774_v0 }
 0x40c   : > { %v747_v14 = vrot.slane %v746_v11, 1  ;;  %v757_v15 = vrot.slane %v756_v5, 1  ;;  %v767_v16 = vrot.slane %v766_v12, 1  ;;  %v777_v17 = vrot.slane %v776_v13, 1 }
 0x40e   : > { %v748_v18 = vadd.f32 %v747_v14, %v746_v11  ;;  %v758_v19 = vadd.f32 %v757_v15, %v756_v5  ;;  %v768_v20 = vadd.f32 %v767_v16, %v766_v12  ;;  %v778_v21 = vadd.f32 %v777_v17, %v776_v13 }
 0x410   : > { %v749_v22 = vmul.f32 0.0625, %v748_v18  ;;  %v759_v1 = vmul.f32 0.0625, %v758_v19  ;;  %v769_v23 = vmul.f32 0.0625, %v768_v20  ;;  %v779_v25 = vmul.f32 0.0625, %v778_v21 }
 0x412   : > { %v750_v2 = vmul.f32 %v1040_v28, %v749_v22  ;;  %v760_v24 = vmul.f32 %v1042_v29, %v759_v1  ;;  %v770_v3 = vmul.f32 %v1045_v34, %v769_v23  ;;  %v780_v30 = vmul.f32 %v1047_v36, %v779_v25  ;;  %v693_v28 = vld [vmem:[%s1159_s7] sm:$0xff] }
 0x414   : > { %v761_v26 = vadd.f32 %v760_v24, %v750_v2 }
 0x416   : > { %v771_v27 = vadd.f32 %v770_v3, %v761_v26 }
 0x418   : > { %v781_v31 = vadd.f32 %v780_v30, %v771_v27 }
 0x41a   : > { %v782_v32 = vadd.f32 1e-05, %v781_v31 }
 0x41c   : > { %922 = vrsqrt.f32 %v782_v32  ;;  %vm789_vm4 = vweird.f32 %v782_v32 }
 0x422   : > { %v923_v33 = vpop.eup %922 }
 0x423   : > { %v784_v35 = vmul.f32 %v923_v33, %v782_v32  ;;  %vm790_vm0 = vweird.f32 %v923_v33 }
 0x424   : > { %vm791_vm5 = vmor %vm789_vm4, %vm790_vm0 }
 0x425   : > { %v785_v37 = vmul.f32 %v923_v33, %v784_v35 }
 0x427   : > { %v786_v38 = vmul.f32 0.5, %v785_v37 }
 0x429   : > { %v787_v39 = vsub.f32 1.5, %v786_v38 }
 0x42b   : > { %v788_v29 = vmul.f32 %v923_v33, %v787_v39 }
 0x42d   : > { %v792_v34 = vsel %vm791_vm5, %v923_v33, %v788_v29 }
 0x42e   : > { %v793_v40 = vmul.f32 %v792_v34, %v693_v28 }
 0x430   : > { %798 = vperm.xlu2 %919, %v793_v40   ;;  %v794_v36 = vmul.f32 %v793_v40, %v736_v48 }
 0x432   : > { %v795_v42 = vsub.f32 %v694_v41, %v794_v36 }
 0x438   : > { %804 = vperm.xlu2 %919, %v795_v42  }
 0x48a   : > { %v799_v43 = vpop.permute.xlu2 %798 }
 0x48b   : > { %v801_v44 = vmul.f32 %v799_v43, %v1115_v7 }
 0x492   : > { %v805_v45 = vpop.permute.xlu2 %804 }
 0x493   : > { %v807_v46 = vadd.f32 %v805_v45, %v801_v44 }
 0x495   : > { %v808_v47 = vadd.f32 %v807_v46, %v1011_v4 }
 0x497   : > { %vm809_vm6 = vcmp.gt.f32.partialorder %v808_v47, 0.0  ;;  %v810_v48 = vmul.f32 0.01, %v808_v47 }
 0x499   : > { %v811_v49 = vsel %vm809_vm6, %v808_v47, %v810_v48 }
 0x49a   : > { %812 = vst [vmem:[%s327_s25] sm:$0xff] %v811_v49 }
 0x49b PF: > { %s19_s30 = sadd.s32 1, %s930_s30  }
 0x49c   : > { %p16_p4 = scmp.ge.s32.totalorder %s19_s30, 4  }
 0x49e   :  { %18 = sbr.rel (!%p16_p4) target bundleno = 1 (0x1), region = 86 }

</bundles_post_ra>
